<compile_context>
chip_gen: v6e
topology: v6e:2x2x1
jax: 0.10.0
libtpu: 0.0.40
codegen_flags: <defaults>
</compile_context>

<pallas_src>
import jax
import jax.numpy as jnp
from jax.experimental import pallas as pl
from jax.experimental.pallas import tpu as pltpu

LN_EPS = 1e-5


def _layernorm(v, g, b):
    mu = jnp.mean(v, axis=-1, keepdims=True)
    var = jnp.mean((v - mu) ** 2, axis=-1, keepdims=True)
    return (v - mu) * jax.lax.rsqrt(var + LN_EPS) * g + b


# ----------------------------- node kernel ----------------------------------
# One grid step = one batch element.  Also emits the hoisted edge projections:
#   xw2[b, i] = x[b, i] @ W2_edge + (b1_edge + b2_edge)
#   xw3[b, j] = x[b, j] @ W3_edge + b3_edge
def _node_kernel(x_ref, idx_ref, w_ref, b_ref, hnode_ref, xw2_ref, xw3_ref):
    N, H = x_ref.shape
    K = idx_ref.shape[-1]

    x = x_ref[...].astype(jnp.float32)                     # (N, H)
    idx = idx_ref[...]                                     # (N, K) int32

    # packed weights: [W_node; V_node_in; V_node_top; V_node_bot; W2_e; W3_e]
    w_node = w_ref[0 * H:1 * H, :]
    w_vin = w_ref[1 * H:2 * H, :]
    w_va = w_ref[2 * H:3 * H, :]
    w_vb = w_ref[3 * H:4 * H, :]
    w2_e = w_ref[4 * H:5 * H, :]
    w3_e = w_ref[5 * H:6 * H, :]

    b = b_ref[...].astype(jnp.float32)                     # (9, H)
    b_node, g1, be1 = b[0:1], b[1:2], b[2:3]
    b_vin, b_v, g2, be2 = b[3:4], b[4:5], b[5:6], b[6:7]
    b12_e, b3_e = b[7:8], b[8:9]

    # --- AttentionEncoder: softmax over the k selected neighbors -------------
    # Written as an (N, N) problem (no (N, k, H) materialisation):
    #   counts[i, j] = #{m : idx[i, m] == j}
    #   agg[i] = x[i] + (counts * exp(s - rowmax)) @ x / rowsum
    inv_sqrt_h = jnp.float32(1.0) / jnp.sqrt(jnp.float32(H))
    s = jax.lax.dot_general(x, x, (((1,), (1,)), ((), ())),
                            preferred_element_type=jnp.float32) * inv_sqrt_h
    j_iota = jax.lax.broadcasted_iota(jnp.int32, (N, N), 1)
    counts = jnp.zeros((N, N), jnp.float32)
    for m in range(K):                                     # K static & small
        counts = counts + (idx[:, m:m + 1] == j_iota).astype(jnp.float32)
    row_max = jnp.max(s, axis=-1, keepdims=True)
    p = counts * jnp.exp(s - row_max)                      # exp <= 1, no overflow
    denom = jnp.sum(p, axis=-1, keepdims=True)
    weighted = jnp.dot(p, x, preferred_element_type=jnp.float32)
    agg = x + weighted / denom                             # (N, H)

    # --- node MLP + LayerNorms ------------------------------------------------
    out = jnp.dot(agg, w_node, preferred_element_type=jnp.float32) + b_node
    h_nb = _layernorm(x + jnp.maximum(out, 0.0), g1, be1)

    vin = jnp.dot(x, w_vin, preferred_element_type=jnp.float32) + b_vin
    v = (jnp.dot(vin, w_va, preferred_element_type=jnp.float32)
         + jnp.dot(h_nb, w_vb, preferred_element_type=jnp.float32) + b_v)
    h_node = _layernorm(h_nb + jnp.maximum(v, 0.0), g2, be2)
    hnode_ref[...] = h_node.astype(hnode_ref.dtype)

    # --- hoisted projections for the edge path -------------------------------
    xw2_ref[...] = (jnp.dot(x, w2_e, preferred_element_type=jnp.float32)
                    + b12_e).astype(xw2_ref.dtype)
    xw3_ref[...] = (jnp.dot(x, w3_e, preferred_element_type=jnp.float32)
                    + b3_e).astype(xw3_ref.dtype)


# ----------------------------- edge kernel ----------------------------------
# One grid step = FT "from"-nodes = FT*N flattened edge rows of one batch.
def _edge_kernel(e_ref, xw2_ref, xw3_ref, w_ref, b_ref, out_ref):
    N, H = xw3_ref.shape
    FT = xw2_ref.shape[0]

    e32 = e_ref[...].astype(jnp.float32)                   # (FT*N, H)

    # packed weights: [W1_e; W_e; V_edge_in; V_edge_top; V_edge_bot]
    w1 = w_ref[0 * H:1 * H, :]
    w_e = w_ref[1 * H:2 * H, :]
    w_vin = w_ref[2 * H:3 * H, :]
    w_va = w_ref[3 * H:4 * H, :]
    w_vb = w_ref[4 * H:5 * H, :]

    b = b_ref[...].astype(jnp.float32)                     # (7, H)
    b_e, g1, be1 = b[0:1], b[1:2], b[2:3]
    b_vin, b_v, g2, be2 = b[3:4], b[4:5], b[5:6], b[6:7]

    # Hoisted per-node projections broadcast to the flattened rows:
    # row r = i*N + j  ->  from-node i (xw2 carries b1+b2), to-node j (xw3: b3).
    xw2 = xw2_ref[...].astype(jnp.float32)                 # (FT, H)
    xw3 = xw3_ref[...].astype(jnp.float32)                 # (N, H)
    from_term = jnp.reshape(jnp.broadcast_to(xw2[:, None, :], (FT, N, H)),
                            (FT * N, H))
    to_term = jnp.reshape(jnp.broadcast_to(xw3[None, :, :], (FT, N, H)),
                          (FT * N, H))

    pre = (jnp.dot(e32, w1, preferred_element_type=jnp.float32)
           + from_term + to_term)
    h = jnp.maximum(jnp.dot(pre, w_e, preferred_element_type=jnp.float32) + b_e,
                    0.0)
    h_nb = _layernorm(e32 + h, g1, be1)

    vin = jnp.dot(e32, w_vin, preferred_element_type=jnp.float32) + b_vin
    v = (jnp.dot(vin, w_va, preferred_element_type=jnp.float32)
         + jnp.dot(h_nb, w_vb, preferred_element_type=jnp.float32) + b_v)
    h_edge = _layernorm(h_nb + jnp.maximum(v, 0.0), g2, be2)
    out_ref[...] = h_edge.astype(out_ref.dtype)


# ----------------------------- wrappers --------------------------------------
def _pick_ft(N, H, in_itemsize, out_itemsize,
             target_rows=1024, vmem_budget=8 * 1024 * 1024):
    """#from-nodes per edge tile (tile covers FT*N flattened rows of N*N edges).

    The VMEM budget (double-buffered in + out blocks) is kept small enough to fit
    the default scoped-VMEM limits on v5e (16 MiB) / v6e / v7x.
    """
    valid = []
    for ft in range(1, N + 1):
        if N % ft:
            continue
        # keep both the (FT, H) and (FT*N, H) blocks sublane-aligned
        if ft != N and (ft % 8 != 0 or (ft * N) % 8 != 0):
            continue
        blk = ft * N * H * (in_itemsize + out_itemsize) * 2   # double-buffered
        if blk > vmem_budget:
            continue
        valid.append(ft)
    if not valid:
        return N
    big = [ft for ft in valid if ft * N <= target_rows]
    return max(big) if big else min(valid)


def node_forward(x, neighbor_index, p):
    B, N, H = x.shape
    K = neighbor_index.shape[2]

    w_stk = jnp.concatenate(
        [p["W_node"], p["W_vin_n"], p["W_v_n"][:H], p["W_v_n"][H:],
         p["W2_e"], p["W3_e"]], axis=0)                        # (6H, H)
    b_stk = jnp.concatenate(
        [p["b_node"], p["g1_n"], p["be1_n"], p["b_vin_n"], p["b_v_n"],
         p["g2_n"], p["be2_n"], p["b1_e"] + p["b2_e"], p["b3_e"]], axis=0)  # (9,H)

    cost = pl.CostEstimate(
        flops=int(B * (4 * N * N * H + 12 * N * H * H)),
        transcendentals=int(B * (N * N + 2 * N)),
        bytes_accessed=int(B * N * (H * x.dtype.itemsize + 4 * K + 3 * 4 * H)
                           + 4 * (6 * H * H + 9 * H)),
    )
    return pl.pallas_call(
        _node_kernel,
        out_shape=(jax.ShapeDtypeStruct((B, N, H), x.dtype),
                   jax.ShapeDtypeStruct((B, N, H), jnp.float32),
                   jax.ShapeDtypeStruct((B, N, H), jnp.float32)),
        grid=(B,),
        in_specs=[
            pl.BlockSpec((None, N, H), lambda b: (b, 0, 0)),
            pl.BlockSpec((None, N, K), lambda b: (b, 0, 0)),
            pl.BlockSpec((6 * H, H), lambda b: (0, 0)),
            pl.BlockSpec((9, H), lambda b: (0, 0)),
        ],
        out_specs=(
            pl.BlockSpec((None, N, H), lambda b: (b, 0, 0)),
            pl.BlockSpec((None, N, H), lambda b: (b, 0, 0)),
            pl.BlockSpec((None, N, H), lambda b: (b, 0, 0)),
        ),
        compiler_params=pltpu.CompilerParams(dimension_semantics=("parallel",)),
        cost_estimate=cost,
    )(x, neighbor_index, w_stk, b_stk)


def edge_forward(e, xw2, xw3, p):
    B, N, _, H = e.shape
    FT = _pick_ft(N, H, e.dtype.itemsize, e.dtype.itemsize)
    TM = FT * N
    e_flat = e.reshape(B, N * N, H)                 # contiguous -> free reshape

    w_stk = jnp.concatenate(
        [p["W1_e"], p["W_e"], p["W_vin_e"], p["W_v_e"][:H], p["W_v_e"][H:]],
        axis=0)                                                  # (5H, H)
    b_stk = jnp.concatenate(
        [p["b_e"], p["g1_e"], p["be1_e"], p["b_vin_e"], p["b_v_e"],
         p["g2_e"], p["be2_e"]], axis=0)                         # (7, H)

    cost = pl.CostEstimate(
        flops=int(10 * B * N * N * H * H),
        transcendentals=int(2 * B * N * N),
        bytes_accessed=int(2 * B * N * N * H * e.dtype.itemsize
                           + 2 * B * N * H * 4 + 4 * (5 * H * H + 7 * H)),
    )
    out = pl.pallas_call(
        _edge_kernel,
        out_shape=jax.ShapeDtypeStruct((B, N * N, H), e.dtype),
        grid=(B, N // FT),
        in_specs=[
            pl.BlockSpec((None, TM, H), lambda b, t: (b, t, 0)),
            pl.BlockSpec((None, FT, H), lambda b, t: (b, t, 0)),
            pl.BlockSpec((None, N, H), lambda b, t: (b, 0, 0)),
            pl.BlockSpec((5 * H, H), lambda b, t: (0, 0)),
            pl.BlockSpec((7, H), lambda b, t: (0, 0)),
        ],
        out_specs=pl.BlockSpec((None, TM, H), lambda b, t: (b, t, 0)),
        compiler_params=pltpu.CompilerParams(
            dimension_semantics=("parallel", "parallel")),
        cost_estimate=cost,
    )(e_flat, xw2, xw3, w_stk, b_stk)
    return out.reshape(B, N, N, H)


def gcn_layer(x, e, neighbor_index, params):
    # Node kernel also emits the hoisted per-node edge projections (xw2, xw3).
    h_node, xw2, xw3 = node_forward(x, neighbor_index, params)
    h_edge = edge_forward(e, xw2, xw3, params)
    return h_node, h_edge


# ----------------------------- params / reference ----------------------------
def init_params(key, H):
    keys = jax.random.split(key, 20)

    def lin(k, fi, fo):
        return 0.1 * jax.random.normal(k, (fi, fo), jnp.float32)

    def bias(k, n):
        return 0.1 * jax.random.normal(k, (1, n), jnp.float32)

    ones = jnp.ones((1, H), jnp.float32)
    zeros = jnp.zeros((1, H), jnp.float32)
    return {
        # node path
        "W_node": lin(keys[0], H, H), "b_node": bias(keys[1], H),
        "g1_n": ones, "be1_n": zeros,
        "W_vin_n": lin(keys[2], H, H), "b_vin_n": bias(keys[3], H),
        "W_v_n": lin(keys[4], 2 * H, H), "b_v_n": bias(keys[5], H),
        "g2_n": ones, "be2_n": zeros,
        # edge path
        "W1_e": lin(keys[6], H, H), "b1_e": bias(keys[7], H),
        "W2_e": lin(keys[8], H, H), "b2_e": bias(keys[9], H),
        "W3_e": lin(keys[10], H, H), "b3_e": bias(keys[11], H),
        "W_e": lin(keys[12], H, H), "b_e": bias(keys[13], H),
        "g1_e": ones, "be1_e": zeros,
        "W_vin_e": lin(keys[14], H, H), "b_vin_e": bias(keys[15], H),
        "W_v_e": lin(keys[16], 2 * H, H), "b_v_e": bias(keys[17], H),
        "g2_e": ones, "be2_e": zeros,
    }


def _reference(x, e, neighbor_index, p):
    """Pure-JAX forward matching the PyTorch GCNLayer (for validation)."""
    def ln(v, g, b):
        mu = jnp.mean(v, -1, keepdims=True)
        var = jnp.mean((v - mu) ** 2, -1, keepdims=True)
        return (v - mu) * jax.lax.rsqrt(var + LN_EPS) * g + b

    _, _, H = x.shape
    nb = jax.vmap(lambda xb, ib: xb[ib])(x, neighbor_index)        # (B,N,k,H)
    s = jnp.einsum("bnh,bnkh->bnk", x, nb) / jnp.sqrt(jnp.float32(H))
    a = jax.nn.softmax(s, axis=-1)
    agg = x + jnp.einsum("bnk,bnkh->bnh", a, nb)
    h_nb_n = ln(x + jax.nn.relu(agg @ p["W_node"] + p["b_node"]),
                p["g1_n"], p["be1_n"])
    vin = x @ p["W_vin_n"] + p["b_vin_n"]
    v = jnp.concatenate([vin, h_nb_n], -1) @ p["W_v_n"] + p["b_v_n"]
    h_node = ln(h_nb_n + jax.nn.relu(v), p["g2_n"], p["be2_n"])

    x_from = x[:, :, None, :]
    x_to = x[:, None, :, :]
    pre = (e @ p["W1_e"] + p["b1_e"] + x_from @ p["W2_e"] + p["b2_e"]
           + x_to @ p["W3_e"] + p["b3_e"])
    h = jax.nn.relu(pre @ p["W_e"] + p["b_e"])
    h_nb_e = ln(e + h, p["g1_e"], p["be1_e"])
    vine = e @ p["W_vin_e"] + p["b_vin_e"]
    ve = jnp.concatenate([vine, h_nb_e], -1) @ p["W_v_e"] + p["b_v_e"]
    h_edge = ln(h_nb_e + jax.nn.relu(ve), p["g2_e"], p["be2_e"])
    return h_node, h_edge


if __name__ == "__main__":
    B, N, H, K = 2, 8, 32, 4
    key = jax.random.PRNGKey(0)
    kx, ke, ki, kp = jax.random.split(key, 4)

    x = jax.random.normal(kx, (B, N, H), jnp.float32)
    e = jax.random.normal(ke, (B, N, N, H), jnp.float32)
    neighbor_index = jax.random.randint(ki, (B, N, K), 0, N)
    params = init_params(kp, H)

    h_node, h_edge = jax.jit(gcn_layer)(x, e, neighbor_index, params)
    jax.block_until_ready((h_node, h_edge))
    assert h_node.shape == (B, N, H) and h_edge.shape == (B, N, N, H)

    # correctness check against a pure-JAX reference of the torch module
    r_node, r_edge = jax.jit(_reference)(x, e, neighbor_index, params)
    err_n = float(jnp.max(jnp.abs(h_node - r_node)))
    err_e = float(jnp.max(jnp.abs(h_edge - r_edge)))
    assert err_n < 5e-2 and err_e < 5e-2, (err_n, err_e)

    print("KERNEL_OK")
</pallas_src>

<mosaic_0001>
module attributes {stable_mosaic.version = 11 : i64} {
  func.func @_node_kernel(%arg0: i32, %arg1: memref<1x8x32xf32, #tpu.memory_space<vmem>>, %arg2: memref<1x8x4xi32, #tpu.memory_space<vmem>>, %arg3: memref<192x32xf32, #tpu.memory_space<vmem>>, %arg4: memref<9x32xf32, #tpu.memory_space<vmem>>, %arg5: memref<1x8x32xf32, #tpu.memory_space<vmem>>, %arg6: memref<1x8x32xf32, #tpu.memory_space<vmem>>, %arg7: memref<1x8x32xf32, #tpu.memory_space<vmem>>) attributes {dimension_semantics = [#tpu.dimension_semantics<parallel>], iteration_bounds = array<i64: 2>, scalar_prefetch = 0 : i64, scratch_operands = 0 : i64, tpu.core_type = #tpu.core_type<tc>, window_params = [{transform_indices = @transform_0, window_bounds = array<i64: 1, 8, 32>}, {transform_indices = @transform_1, window_bounds = array<i64: 1, 8, 4>}, {pipeline_mode = #tpu.pipeline_mode<synchronous>, transform_indices = @transform_2, window_bounds = array<i64: 192, 32>}, {pipeline_mode = #tpu.pipeline_mode<synchronous>, transform_indices = @transform_3, window_bounds = array<i64: 9, 32>}, {transform_indices = @transform_4, window_bounds = array<i64: 1, 8, 32>}, {transform_indices = @transform_5, window_bounds = array<i64: 1, 8, 32>}, {transform_indices = @transform_6, window_bounds = array<i64: 1, 8, 32>}]} {
    %c0 = arith.constant 0 : index
    %c0_0 = arith.constant 0 : index
    %c0_1 = arith.constant 0 : index
    %0 = vector.load %arg1[%c0, %c0_0, %c0_1] : memref<1x8x32xf32, #tpu.memory_space<vmem>>, vector<1x8x32xf32>
    %1 = vector.shape_cast %0 : vector<1x8x32xf32> to vector<8x32xf32>
    %c0_2 = arith.constant 0 : index
    %c0_3 = arith.constant 0 : index
    %c0_4 = arith.constant 0 : index
    %2 = vector.load %arg2[%c0_2, %c0_3, %c0_4] : memref<1x8x4xi32, #tpu.memory_space<vmem>>, vector<1x8x4xi32>
    %3 = vector.shape_cast %2 : vector<1x8x4xi32> to vector<8x4xi32>
    %c0_5 = arith.constant 0 : index
    %c0_6 = arith.constant 0 : index
    %4 = vector.load %arg3[%c0_5, %c0_6] : memref<192x32xf32, #tpu.memory_space<vmem>>, vector<32x32xf32>
    %c32 = arith.constant 32 : index
    %c0_7 = arith.constant 0 : index
    %5 = vector.load %arg3[%c32, %c0_7] : memref<192x32xf32, #tpu.memory_space<vmem>>, vector<32x32xf32>
    %c64 = arith.constant 64 : index
    %c0_8 = arith.constant 0 : index
    %6 = vector.load %arg3[%c64, %c0_8] : memref<192x32xf32, #tpu.memory_space<vmem>>, vector<32x32xf32>
    %c96 = arith.constant 96 : index
    %c0_9 = arith.constant 0 : index
    %7 = vector.load %arg3[%c96, %c0_9] : memref<192x32xf32, #tpu.memory_space<vmem>>, vector<32x32xf32>
    %c128 = arith.constant 128 : index
    %c0_10 = arith.constant 0 : index
    %8 = vector.load %arg3[%c128, %c0_10] : memref<192x32xf32, #tpu.memory_space<vmem>>, vector<32x32xf32>
    %c160 = arith.constant 160 : index
    %c0_11 = arith.constant 0 : index
    %9 = vector.load %arg3[%c160, %c0_11] : memref<192x32xf32, #tpu.memory_space<vmem>>, vector<32x32xf32>
    %c0_12 = arith.constant 0 : index
    %c0_13 = arith.constant 0 : index
    %10 = vector.load %arg4[%c0_12, %c0_13] : memref<9x32xf32, #tpu.memory_space<vmem>>, vector<9x32xf32>
    %11 = vector.extract_strided_slice %10 {offsets = [0, 0], sizes = [1, 32], strides = [1, 1]} : vector<9x32xf32> to vector<1x32xf32>
    %12 = vector.extract_strided_slice %10 {offsets = [1, 0], sizes = [1, 32], strides = [1, 1]} : vector<9x32xf32> to vector<1x32xf32>
    %13 = vector.extract_strided_slice %10 {offsets = [2, 0], sizes = [1, 32], strides = [1, 1]} : vector<9x32xf32> to vector<1x32xf32>
    %14 = vector.extract_strided_slice %10 {offsets = [3, 0], sizes = [1, 32], strides = [1, 1]} : vector<9x32xf32> to vector<1x32xf32>
    %15 = vector.extract_strided_slice %10 {offsets = [4, 0], sizes = [1, 32], strides = [1, 1]} : vector<9x32xf32> to vector<1x32xf32>
    %16 = vector.extract_strided_slice %10 {offsets = [5, 0], sizes = [1, 32], strides = [1, 1]} : vector<9x32xf32> to vector<1x32xf32>
    %17 = vector.extract_strided_slice %10 {offsets = [6, 0], sizes = [1, 32], strides = [1, 1]} : vector<9x32xf32> to vector<1x32xf32>
    %18 = vector.extract_strided_slice %10 {offsets = [7, 0], sizes = [1, 32], strides = [1, 1]} : vector<9x32xf32> to vector<1x32xf32>
    %19 = vector.extract_strided_slice %10 {offsets = [8, 0], sizes = [1, 32], strides = [1, 1]} : vector<9x32xf32> to vector<1x32xf32>
    %cst = arith.constant 3.200000e+01 : f32
    %20 = math.sqrt %cst : f32
    %cst_14 = arith.constant 1.000000e+00 : f32
    %21 = arith.divf %cst_14, %20 : f32
    %cst_15 = arith.constant dense<0.000000e+00> : vector<8x8xf32>
    %22 = tpu.matmul %1, %1, %cst_15 {dimension_numbers = #tpu.dot_dimension_numbers<[1], [1], [0], [0], [0, 0, 1, 0], [], []>} : vector<8x32xf32>, vector<8x32xf32>, vector<8x8xf32> -> vector<8x8xf32>
    %23 = vector.broadcast %21 : f32 to vector<8x8xf32>
    %24 = arith.mulf %22, %23 : vector<8x8xf32>
    %25 = tpu.iota {dimensions = array<i32: 1>} : vector<8x8xi32>
    %cst_16 = arith.constant 0.000000e+00 : f32
    %26 = vector.broadcast %cst_16 : f32 to vector<8x8xf32>
    %27 = vector.extract_strided_slice %3 {offsets = [0, 0], sizes = [8, 1], strides = [1, 1]} : vector<8x4xi32> to vector<8x1xi32>
    %28 = vector.broadcast %27 : vector<8x1xi32> to vector<8x8xi32>
    %29 = arith.cmpi eq, %28, %25 : vector<8x8xi32>
    %30 = arith.extui %29 : vector<8x8xi1> to vector<8x8xi32>
    %31 = arith.sitofp %30 : vector<8x8xi32> to vector<8x8xf32>
    %32 = arith.addf %26, %31 : vector<8x8xf32>
    %33 = vector.extract_strided_slice %3 {offsets = [0, 1], sizes = [8, 1], strides = [1, 1]} : vector<8x4xi32> to vector<8x1xi32>
    %34 = vector.broadcast %33 : vector<8x1xi32> to vector<8x8xi32>
    %35 = arith.cmpi eq, %34, %25 : vector<8x8xi32>
    %36 = arith.extui %35 : vector<8x8xi1> to vector<8x8xi32>
    %37 = arith.sitofp %36 : vector<8x8xi32> to vector<8x8xf32>
    %38 = arith.addf %32, %37 : vector<8x8xf32>
    %39 = vector.extract_strided_slice %3 {offsets = [0, 2], sizes = [8, 1], strides = [1, 1]} : vector<8x4xi32> to vector<8x1xi32>
    %40 = vector.broadcast %39 : vector<8x1xi32> to vector<8x8xi32>
    %41 = arith.cmpi eq, %40, %25 : vector<8x8xi32>
    %42 = arith.extui %41 : vector<8x8xi1> to vector<8x8xi32>
    %43 = arith.sitofp %42 : vector<8x8xi32> to vector<8x8xf32>
    %44 = arith.addf %38, %43 : vector<8x8xf32>
    %45 = vector.extract_strided_slice %3 {offsets = [0, 3], sizes = [8, 1], strides = [1, 1]} : vector<8x4xi32> to vector<8x1xi32>
    %46 = vector.broadcast %45 : vector<8x1xi32> to vector<8x8xi32>
    %47 = arith.cmpi eq, %46, %25 : vector<8x8xi32>
    %48 = arith.extui %47 : vector<8x8xi1> to vector<8x8xi32>
    %49 = arith.sitofp %48 : vector<8x8xi32> to vector<8x8xf32>
    %50 = arith.addf %44, %49 : vector<8x8xf32>
    %cst_17 = arith.constant dense<0xFF800000> : vector<8xf32>
    %51 = vector.multi_reduction <maximumf>, %24, %cst_17 [1] : vector<8x8xf32> to vector<8xf32>
    %52 = vector.shape_cast %51 : vector<8xf32> to vector<8x1xf32>
    %53 = vector.broadcast %52 : vector<8x1xf32> to vector<8x8xf32>
    %54 = arith.subf %24, %53 : vector<8x8xf32>
    %55 = math.exp %54 : vector<8x8xf32>
    %56 = arith.mulf %50, %55 : vector<8x8xf32>
    %cst_18 = arith.constant dense<0.000000e+00> : vector<8xf32>
    %57 = vector.multi_reduction <add>, %56, %cst_18 [1] : vector<8x8xf32> to vector<8xf32>
    %58 = vector.shape_cast %57 : vector<8xf32> to vector<8x1xf32>
    %cst_19 = arith.constant dense<0.000000e+00> : vector<8x32xf32>
    %59 = tpu.matmul %56, %1, %cst_19 {dimension_numbers = #tpu.dot_dimension_numbers<[1], [0], [0], [1], [0, 0, 1, 1], [], []>} : vector<8x8xf32>, vector<8x32xf32>, vector<8x32xf32> -> vector<8x32xf32>
    %60 = vector.broadcast %58 : vector<8x1xf32> to vector<8x32xf32>
    %61 = arith.divf %59, %60 : vector<8x32xf32>
    %62 = arith.addf %1, %61 : vector<8x32xf32>
    %cst_20 = arith.constant dense<0.000000e+00> : vector<8x32xf32>
    %63 = tpu.matmul %62, %4, %cst_20 {dimension_numbers = #tpu.dot_dimension_numbers<[1], [0], [0], [1], [0, 0, 1, 1], [], []>} : vector<8x32xf32>, vector<32x32xf32>, vector<8x32xf32> -> vector<8x32xf32>
    %64 = vector.broadcast %11 : vector<1x32xf32> to vector<8x32xf32>
    %65 = arith.addf %63, %64 : vector<8x32xf32>
    %cst_21 = arith.constant 0.000000e+00 : f32
    %66 = vector.broadcast %cst_21 : f32 to vector<8x32xf32>
    %67 = arith.maximumf %65, %66 : vector<8x32xf32>
    %68 = arith.addf %1, %67 : vector<8x32xf32>
    %cst_22 = arith.constant dense<0.000000e+00> : vector<8xf32>
    %69 = vector.multi_reduction <add>, %68, %cst_22 [1] : vector<8x32xf32> to vector<8xf32>
    %70 = vector.shape_cast %69 : vector<8xf32> to vector<8x1xf32>
    %cst_23 = arith.constant 3.200000e+01 : f32
    %71 = vector.broadcast %cst_23 : f32 to vector<8x1xf32>
    %72 = arith.divf %70, %71 : vector<8x1xf32>
    %73 = vector.broadcast %72 : vector<8x1xf32> to vector<8x32xf32>
    %74 = arith.subf %68, %73 : vector<8x32xf32>
    %75 = arith.mulf %74, %74 : vector<8x32xf32>
    %cst_24 = arith.constant dense<0.000000e+00> : vector<8xf32>
    %76 = vector.multi_reduction <add>, %75, %cst_24 [1] : vector<8x32xf32> to vector<8xf32>
    %77 = vector.shape_cast %76 : vector<8xf32> to vector<8x1xf32>
    %cst_25 = arith.constant 3.200000e+01 : f32
    %78 = vector.broadcast %cst_25 : f32 to vector<8x1xf32>
    %79 = arith.divf %77, %78 : vector<8x1xf32>
    %80 = vector.broadcast %72 : vector<8x1xf32> to vector<8x32xf32>
    %81 = arith.subf %68, %80 : vector<8x32xf32>
    %cst_26 = arith.constant 9.99999974E-6 : f32
    %82 = vector.broadcast %cst_26 : f32 to vector<8x1xf32>
    %83 = arith.addf %79, %82 : vector<8x1xf32>
    %84 = math.rsqrt %83 : vector<8x1xf32>
    %85 = vector.broadcast %84 : vector<8x1xf32> to vector<8x32xf32>
    %86 = arith.mulf %81, %85 : vector<8x32xf32>
    %87 = vector.broadcast %12 : vector<1x32xf32> to vector<8x32xf32>
    %88 = arith.mulf %86, %87 : vector<8x32xf32>
    %89 = vector.broadcast %13 : vector<1x32xf32> to vector<8x32xf32>
    %90 = arith.addf %88, %89 : vector<8x32xf32>
    %cst_27 = arith.constant dense<0.000000e+00> : vector<8x32xf32>
    %91 = tpu.matmul %1, %5, %cst_27 {dimension_numbers = #tpu.dot_dimension_numbers<[1], [0], [0], [1], [0, 0, 1, 1], [], []>} : vector<8x32xf32>, vector<32x32xf32>, vector<8x32xf32> -> vector<8x32xf32>
    %92 = vector.broadcast %14 : vector<1x32xf32> to vector<8x32xf32>
    %93 = arith.addf %91, %92 : vector<8x32xf32>
    %cst_28 = arith.constant dense<0.000000e+00> : vector<8x32xf32>
    %94 = tpu.matmul %93, %6, %cst_28 {dimension_numbers = #tpu.dot_dimension_numbers<[1], [0], [0], [1], [0, 0, 1, 1], [], []>} : vector<8x32xf32>, vector<32x32xf32>, vector<8x32xf32> -> vector<8x32xf32>
    %cst_29 = arith.constant dense<0.000000e+00> : vector<8x32xf32>
    %95 = tpu.matmul %90, %7, %cst_29 {dimension_numbers = #tpu.dot_dimension_numbers<[1], [0], [0], [1], [0, 0, 1, 1], [], []>} : vector<8x32xf32>, vector<32x32xf32>, vector<8x32xf32> -> vector<8x32xf32>
    %96 = arith.addf %94, %95 : vector<8x32xf32>
    %97 = vector.broadcast %15 : vector<1x32xf32> to vector<8x32xf32>
    %98 = arith.addf %96, %97 : vector<8x32xf32>
    %cst_30 = arith.constant 0.000000e+00 : f32
    %99 = vector.broadcast %cst_30 : f32 to vector<8x32xf32>
    %100 = arith.maximumf %98, %99 : vector<8x32xf32>
    %101 = arith.addf %90, %100 : vector<8x32xf32>
    %cst_31 = arith.constant dense<0.000000e+00> : vector<8xf32>
    %102 = vector.multi_reduction <add>, %101, %cst_31 [1] : vector<8x32xf32> to vector<8xf32>
    %103 = vector.shape_cast %102 : vector<8xf32> to vector<8x1xf32>
    %cst_32 = arith.constant 3.200000e+01 : f32
    %104 = vector.broadcast %cst_32 : f32 to vector<8x1xf32>
    %105 = arith.divf %103, %104 : vector<8x1xf32>
    %106 = vector.broadcast %105 : vector<8x1xf32> to vector<8x32xf32>
    %107 = arith.subf %101, %106 : vector<8x32xf32>
    %108 = arith.mulf %107, %107 : vector<8x32xf32>
    %cst_33 = arith.constant dense<0.000000e+00> : vector<8xf32>
    %109 = vector.multi_reduction <add>, %108, %cst_33 [1] : vector<8x32xf32> to vector<8xf32>
    %110 = vector.shape_cast %109 : vector<8xf32> to vector<8x1xf32>
    %cst_34 = arith.constant 3.200000e+01 : f32
    %111 = vector.broadcast %cst_34 : f32 to vector<8x1xf32>
    %112 = arith.divf %110, %111 : vector<8x1xf32>
    %113 = vector.broadcast %105 : vector<8x1xf32> to vector<8x32xf32>
    %114 = arith.subf %101, %113 : vector<8x32xf32>
    %cst_35 = arith.constant 9.99999974E-6 : f32
    %115 = vector.broadcast %cst_35 : f32 to vector<8x1xf32>
    %116 = arith.addf %112, %115 : vector<8x1xf32>
    %117 = math.rsqrt %116 : vector<8x1xf32>
    %118 = vector.broadcast %117 : vector<8x1xf32> to vector<8x32xf32>
    %119 = arith.mulf %114, %118 : vector<8x32xf32>
    %120 = vector.broadcast %16 : vector<1x32xf32> to vector<8x32xf32>
    %121 = arith.mulf %119, %120 : vector<8x32xf32>
    %122 = vector.broadcast %17 : vector<1x32xf32> to vector<8x32xf32>
    %123 = arith.addf %121, %122 : vector<8x32xf32>
    %c0_36 = arith.constant 0 : index
    %c0_37 = arith.constant 0 : index
    %c0_38 = arith.constant 0 : index
    %124 = vector.load %arg5[%c0_36, %c0_37, %c0_38] : memref<1x8x32xf32, #tpu.memory_space<vmem>>, vector<1x8x32xf32>
    %125 = vector.shape_cast %124 : vector<1x8x32xf32> to vector<8x32xf32>
    %126 = vector.shape_cast %123 : vector<8x32xf32> to vector<1x8x32xf32>
    tpu.vector_store %arg5[%c0_36, %c0_37, %c0_38], %126 {strides = array<i32>} : memref<1x8x32xf32, #tpu.memory_space<vmem>>, vector<1x8x32xf32>,
    %cst_39 = arith.constant dense<0.000000e+00> : vector<8x32xf32>
    %127 = tpu.matmul %1, %8, %cst_39 {dimension_numbers = #tpu.dot_dimension_numbers<[1], [0], [0], [1], [0, 0, 1, 1], [], []>} : vector<8x32xf32>, vector<32x32xf32>, vector<8x32xf32> -> vector<8x32xf32>
    %128 = vector.broadcast %18 : vector<1x32xf32> to vector<8x32xf32>
    %129 = arith.addf %127, %128 : vector<8x32xf32>
    %c0_40 = arith.constant 0 : index
    %c0_41 = arith.constant 0 : index
    %c0_42 = arith.constant 0 : index
    %130 = vector.load %arg6[%c0_40, %c0_41, %c0_42] : memref<1x8x32xf32, #tpu.memory_space<vmem>>, vector<1x8x32xf32>
    %131 = vector.shape_cast %130 : vector<1x8x32xf32> to vector<8x32xf32>
    %132 = vector.shape_cast %129 : vector<8x32xf32> to vector<1x8x32xf32>
    tpu.vector_store %arg6[%c0_40, %c0_41, %c0_42], %132 {strides = array<i32>} : memref<1x8x32xf32, #tpu.memory_space<vmem>>, vector<1x8x32xf32>,
    %cst_43 = arith.constant dense<0.000000e+00> : vector<8x32xf32>
    %133 = tpu.matmul %1, %9, %cst_43 {dimension_numbers = #tpu.dot_dimension_numbers<[1], [0], [0], [1], [0, 0, 1, 1], [], []>} : vector<8x32xf32>, vector<32x32xf32>, vector<8x32xf32> -> vector<8x32xf32>
    %134 = vector.broadcast %19 : vector<1x32xf32> to vector<8x32xf32>
    %135 = arith.addf %133, %134 : vector<8x32xf32>
    %c0_44 = arith.constant 0 : index
    %c0_45 = arith.constant 0 : index
    %c0_46 = arith.constant 0 : index
    %136 = vector.load %arg7[%c0_44, %c0_45, %c0_46] : memref<1x8x32xf32, #tpu.memory_space<vmem>>, vector<1x8x32xf32>
    %137 = vector.shape_cast %136 : vector<1x8x32xf32> to vector<8x32xf32>
    %138 = vector.shape_cast %135 : vector<8x32xf32> to vector<1x8x32xf32>
    tpu.vector_store %arg7[%c0_44, %c0_45, %c0_46], %138 {strides = array<i32>} : memref<1x8x32xf32, #tpu.memory_space<vmem>>, vector<1x8x32xf32>,
    return
  }
  func.func @transform_0(%arg0: i32) -> (i32, i32, i32) {
    %c0_i32 = arith.constant 0 : i32
    %c0_i32_0 = arith.constant 0 : i32
    %c0_i32_1 = arith.constant 0 : i32
    return %arg0, %c0_i32, %c0_i32_0 : i32, i32, i32
  }
  func.func @transform_1(%arg0: i32) -> (i32, i32, i32) {
    %c0_i32 = arith.constant 0 : i32
    %c0_i32_0 = arith.constant 0 : i32
    %c0_i32_1 = arith.constant 0 : i32
    return %arg0, %c0_i32, %c0_i32_0 : i32, i32, i32
  }
  func.func @transform_2(%arg0: i32) -> (i32, i32) {
    %c0_i32 = arith.constant 0 : i32
    %c0_i32_0 = arith.constant 0 : i32
    %c0_i32_1 = arith.constant 0 : i32
    return %c0_i32, %c0_i32_0 : i32, i32
  }
  func.func @transform_3(%arg0: i32) -> (i32, i32) {
    %c0_i32 = arith.constant 0 : i32
    %c0_i32_0 = arith.constant 0 : i32
    %c0_i32_1 = arith.constant 0 : i32
    return %c0_i32, %c0_i32_0 : i32, i32
  }
  func.func @transform_4(%arg0: i32) -> (i32, i32, i32) {
    %c0_i32 = arith.constant 0 : i32
    %c0_i32_0 = arith.constant 0 : i32
    %c0_i32_1 = arith.constant 0 : i32
    return %arg0, %c0_i32, %c0_i32_0 : i32, i32, i32
  }
  func.func @transform_5(%arg0: i32) -> (i32, i32, i32) {
    %c0_i32 = arith.constant 0 : i32
    %c0_i32_0 = arith.constant 0 : i32
    %c0_i32_1 = arith.constant 0 : i32
    return %arg0, %c0_i32, %c0_i32_0 : i32, i32, i32
  }
  func.func @transform_6(%arg0: i32) -> (i32, i32, i32) {
    %c0_i32 = arith.constant 0 : i32
    %c0_i32_0 = arith.constant 0 : i32
    %c0_i32_1 = arith.constant 0 : i32
    return %arg0, %c0_i32, %c0_i32_0 : i32, i32, i32
  }
}

module attributes {stable_mosaic.version = 11 : i64} {
  func.func @_edge_kernel(%arg0: i32, %arg1: i32, %arg2: memref<1x64x32xf32, #tpu.memory_space<vmem>>, %arg3: memref<1x8x32xf32, #tpu.memory_space<vmem>>, %arg4: memref<1x8x32xf32, #tpu.memory_space<vmem>>, %arg5: memref<160x32xf32, #tpu.memory_space<vmem>>, %arg6: memref<7x32xf32, #tpu.memory_space<vmem>>, %arg7: memref<1x64x32xf32, #tpu.memory_space<vmem>>) attributes {dimension_semantics = [#tpu.dimension_semantics<parallel>, #tpu.dimension_semantics<parallel>], iteration_bounds = array<i64: 2, 1>, scalar_prefetch = 0 : i64, scratch_operands = 0 : i64, tpu.core_type = #tpu.core_type<tc>, window_params = [{transform_indices = @transform_0, window_bounds = array<i64: 1, 64, 32>}, {transform_indices = @transform_1, window_bounds = array<i64: 1, 8, 32>}, {transform_indices = @transform_2, window_bounds = array<i64: 1, 8, 32>}, {pipeline_mode = #tpu.pipeline_mode<synchronous>, transform_indices = @transform_3, window_bounds = array<i64: 160, 32>}, {pipeline_mode = #tpu.pipeline_mode<synchronous>, transform_indices = @transform_4, window_bounds = array<i64: 7, 32>}, {transform_indices = @transform_5, window_bounds = array<i64: 1, 64, 32>}]} {
    %c0 = arith.constant 0 : index
    %c0_0 = arith.constant 0 : index
    %c0_1 = arith.constant 0 : index
    %0 = vector.load %arg2[%c0, %c0_0, %c0_1] : memref<1x64x32xf32, #tpu.memory_space<vmem>>, vector<1x64x32xf32>
    %1 = vector.shape_cast %0 : vector<1x64x32xf32> to vector<64x32xf32>
    %c0_2 = arith.constant 0 : index
    %c0_3 = arith.constant 0 : index
    %2 = vector.load %arg5[%c0_2, %c0_3] : memref<160x32xf32, #tpu.memory_space<vmem>>, vector<32x32xf32>
    %c32 = arith.constant 32 : index
    %c0_4 = arith.constant 0 : index
    %3 = vector.load %arg5[%c32, %c0_4] : memref<160x32xf32, #tpu.memory_space<vmem>>, vector<32x32xf32>
    %c64 = arith.constant 64 : index
    %c0_5 = arith.constant 0 : index
    %4 = vector.load %arg5[%c64, %c0_5] : memref<160x32xf32, #tpu.memory_space<vmem>>, vector<32x32xf32>
    %c96 = arith.constant 96 : index
    %c0_6 = arith.constant 0 : index
    %5 = vector.load %arg5[%c96, %c0_6] : memref<160x32xf32, #tpu.memory_space<vmem>>, vector<32x32xf32>
    %c128 = arith.constant 128 : index
    %c0_7 = arith.constant 0 : index
    %6 = vector.load %arg5[%c128, %c0_7] : memref<160x32xf32, #tpu.memory_space<vmem>>, vector<32x32xf32>
    %c0_8 = arith.constant 0 : index
    %c0_9 = arith.constant 0 : index
    %7 = vector.load %arg6[%c0_8, %c0_9] : memref<7x32xf32, #tpu.memory_space<vmem>>, vector<7x32xf32>
    %8 = vector.extract_strided_slice %7 {offsets = [0, 0], sizes = [1, 32], strides = [1, 1]} : vector<7x32xf32> to vector<1x32xf32>
    %9 = vector.extract_strided_slice %7 {offsets = [1, 0], sizes = [1, 32], strides = [1, 1]} : vector<7x32xf32> to vector<1x32xf32>
    %10 = vector.extract_strided_slice %7 {offsets = [2, 0], sizes = [1, 32], strides = [1, 1]} : vector<7x32xf32> to vector<1x32xf32>
    %11 = vector.extract_strided_slice %7 {offsets = [3, 0], sizes = [1, 32], strides = [1, 1]} : vector<7x32xf32> to vector<1x32xf32>
    %12 = vector.extract_strided_slice %7 {offsets = [4, 0], sizes = [1, 32], strides = [1, 1]} : vector<7x32xf32> to vector<1x32xf32>
    %13 = vector.extract_strided_slice %7 {offsets = [5, 0], sizes = [1, 32], strides = [1, 1]} : vector<7x32xf32> to vector<1x32xf32>
    %14 = vector.extract_strided_slice %7 {offsets = [6, 0], sizes = [1, 32], strides = [1, 1]} : vector<7x32xf32> to vector<1x32xf32>
    %c0_10 = arith.constant 0 : index
    %c0_11 = arith.constant 0 : index
    %c0_12 = arith.constant 0 : index
    %15 = vector.load %arg3[%c0_10, %c0_11, %c0_12] : memref<1x8x32xf32, #tpu.memory_space<vmem>>, vector<1x8x32xf32>
    %16 = vector.shape_cast %15 : vector<1x8x32xf32> to vector<8x32xf32>
    %c0_13 = arith.constant 0 : index
    %c0_14 = arith.constant 0 : index
    %c0_15 = arith.constant 0 : index
    %17 = vector.load %arg4[%c0_13, %c0_14, %c0_15] : memref<1x8x32xf32, #tpu.memory_space<vmem>>, vector<1x8x32xf32>
    %18 = vector.shape_cast %17 : vector<1x8x32xf32> to vector<8x32xf32>
    %19 = vector.shape_cast %16 : vector<8x32xf32> to vector<8x1x32xf32>
    %20 = vector.shape_cast %19 : vector<8x1x32xf32> to vector<8x1x32xf32>
    %21 = vector.broadcast %20 : vector<8x1x32xf32> to vector<8x8x32xf32>
    %22 = vector.shape_cast %21 : vector<8x8x32xf32> to vector<64x32xf32>
    %23 = vector.shape_cast %18 : vector<8x32xf32> to vector<1x8x32xf32>
    %24 = vector.shape_cast %23 : vector<1x8x32xf32> to vector<1x8x32xf32>
    %25 = vector.broadcast %24 : vector<1x8x32xf32> to vector<8x8x32xf32>
    %26 = vector.shape_cast %25 : vector<8x8x32xf32> to vector<64x32xf32>
    %cst = arith.constant dense<0.000000e+00> : vector<64x32xf32>
    %27 = tpu.matmul %1, %2, %cst {dimension_numbers = #tpu.dot_dimension_numbers<[1], [0], [0], [1], [0, 0, 1, 1], [], []>} : vector<64x32xf32>, vector<32x32xf32>, vector<64x32xf32> -> vector<64x32xf32>
    %28 = arith.addf %27, %22 : vector<64x32xf32>
    %29 = arith.addf %28, %26 : vector<64x32xf32>
    %cst_16 = arith.constant dense<0.000000e+00> : vector<64x32xf32>
    %30 = tpu.matmul %29, %3, %cst_16 {dimension_numbers = #tpu.dot_dimension_numbers<[1], [0], [0], [1], [0, 0, 1, 1], [], []>} : vector<64x32xf32>, vector<32x32xf32>, vector<64x32xf32> -> vector<64x32xf32>
    %31 = vector.broadcast %8 : vector<1x32xf32> to vector<64x32xf32>
    %32 = arith.addf %30, %31 : vector<64x32xf32>
    %cst_17 = arith.constant 0.000000e+00 : f32
    %33 = vector.broadcast %cst_17 : f32 to vector<64x32xf32>
    %34 = arith.maximumf %32, %33 : vector<64x32xf32>
    %35 = arith.addf %1, %34 : vector<64x32xf32>
    %cst_18 = arith.constant dense<0.000000e+00> : vector<64xf32>
    %36 = vector.multi_reduction <add>, %35, %cst_18 [1] : vector<64x32xf32> to vector<64xf32>
    %37 = vector.shape_cast %36 : vector<64xf32> to vector<64x1xf32>
    %cst_19 = arith.constant 3.200000e+01 : f32
    %38 = vector.broadcast %cst_19 : f32 to vector<64x1xf32>
    %39 = arith.divf %37, %38 : vector<64x1xf32>
    %40 = vector.broadcast %39 : vector<64x1xf32> to vector<64x32xf32>
    %41 = arith.subf %35, %40 : vector<64x32xf32>
    %42 = arith.mulf %41, %41 : vector<64x32xf32>
    %cst_20 = arith.constant dense<0.000000e+00> : vector<64xf32>
    %43 = vector.multi_reduction <add>, %42, %cst_20 [1] : vector<64x32xf32> to vector<64xf32>
    %44 = vector.shape_cast %43 : vector<64xf32> to vector<64x1xf32>
    %cst_21 = arith.constant 3.200000e+01 : f32
    %45 = vector.broadcast %cst_21 : f32 to vector<64x1xf32>
    %46 = arith.divf %44, %45 : vector<64x1xf32>
    %47 = vector.broadcast %39 : vector<64x1xf32> to vector<64x32xf32>
    %48 = arith.subf %35, %47 : vector<64x32xf32>
    %cst_22 = arith.constant 9.99999974E-6 : f32
    %49 = vector.broadcast %cst_22 : f32 to vector<64x1xf32>
    %50 = arith.addf %46, %49 : vector<64x1xf32>
    %51 = math.rsqrt %50 : vector<64x1xf32>
    %52 = vector.broadcast %51 : vector<64x1xf32> to vector<64x32xf32>
    %53 = arith.mulf %48, %52 : vector<64x32xf32>
    %54 = vector.broadcast %9 : vector<1x32xf32> to vector<64x32xf32>
    %55 = arith.mulf %53, %54 : vector<64x32xf32>
    %56 = vector.broadcast %10 : vector<1x32xf32> to vector<64x32xf32>
    %57 = arith.addf %55, %56 : vector<64x32xf32>
    %cst_23 = arith.constant dense<0.000000e+00> : vector<64x32xf32>
    %58 = tpu.matmul %1, %4, %cst_23 {dimension_numbers = #tpu.dot_dimension_numbers<[1], [0], [0], [1], [0, 0, 1, 1], [], []>} : vector<64x32xf32>, vector<32x32xf32>, vector<64x32xf32> -> vector<64x32xf32>
    %59 = vector.broadcast %11 : vector<1x32xf32> to vector<64x32xf32>
    %60 = arith.addf %58, %59 : vector<64x32xf32>
    %cst_24 = arith.constant dense<0.000000e+00> : vector<64x32xf32>
    %61 = tpu.matmul %60, %5, %cst_24 {dimension_numbers = #tpu.dot_dimension_numbers<[1], [0], [0], [1], [0, 0, 1, 1], [], []>} : vector<64x32xf32>, vector<32x32xf32>, vector<64x32xf32> -> vector<64x32xf32>
    %cst_25 = arith.constant dense<0.000000e+00> : vector<64x32xf32>
    %62 = tpu.matmul %57, %6, %cst_25 {dimension_numbers = #tpu.dot_dimension_numbers<[1], [0], [0], [1], [0, 0, 1, 1], [], []>} : vector<64x32xf32>, vector<32x32xf32>, vector<64x32xf32> -> vector<64x32xf32>
    %63 = arith.addf %61, %62 : vector<64x32xf32>
    %64 = vector.broadcast %12 : vector<1x32xf32> to vector<64x32xf32>
    %65 = arith.addf %63, %64 : vector<64x32xf32>
    %cst_26 = arith.constant 0.000000e+00 : f32
    %66 = vector.broadcast %cst_26 : f32 to vector<64x32xf32>
    %67 = arith.maximumf %65, %66 : vector<64x32xf32>
    %68 = arith.addf %57, %67 : vector<64x32xf32>
    %cst_27 = arith.constant dense<0.000000e+00> : vector<64xf32>
    %69 = vector.multi_reduction <add>, %68, %cst_27 [1] : vector<64x32xf32> to vector<64xf32>
    %70 = vector.shape_cast %69 : vector<64xf32> to vector<64x1xf32>
    %cst_28 = arith.constant 3.200000e+01 : f32
    %71 = vector.broadcast %cst_28 : f32 to vector<64x1xf32>
    %72 = arith.divf %70, %71 : vector<64x1xf32>
    %73 = vector.broadcast %72 : vector<64x1xf32> to vector<64x32xf32>
    %74 = arith.subf %68, %73 : vector<64x32xf32>
    %75 = arith.mulf %74, %74 : vector<64x32xf32>
    %cst_29 = arith.constant dense<0.000000e+00> : vector<64xf32>
    %76 = vector.multi_reduction <add>, %75, %cst_29 [1] : vector<64x32xf32> to vector<64xf32>
    %77 = vector.shape_cast %76 : vector<64xf32> to vector<64x1xf32>
    %cst_30 = arith.constant 3.200000e+01 : f32
    %78 = vector.broadcast %cst_30 : f32 to vector<64x1xf32>
    %79 = arith.divf %77, %78 : vector<64x1xf32>
    %80 = vector.broadcast %72 : vector<64x1xf32> to vector<64x32xf32>
    %81 = arith.subf %68, %80 : vector<64x32xf32>
    %cst_31 = arith.constant 9.99999974E-6 : f32
    %82 = vector.broadcast %cst_31 : f32 to vector<64x1xf32>
    %83 = arith.addf %79, %82 : vector<64x1xf32>
    %84 = math.rsqrt %83 : vector<64x1xf32>
    %85 = vector.broadcast %84 : vector<64x1xf32> to vector<64x32xf32>
    %86 = arith.mulf %81, %85 : vector<64x32xf32>
    %87 = vector.broadcast %13 : vector<1x32xf32> to vector<64x32xf32>
    %88 = arith.mulf %86, %87 : vector<64x32xf32>
    %89 = vector.broadcast %14 : vector<1x32xf32> to vector<64x32xf32>
    %90 = arith.addf %88, %89 : vector<64x32xf32>
    %c0_32 = arith.constant 0 : index
    %c0_33 = arith.constant 0 : index
    %c0_34 = arith.constant 0 : index
    %91 = vector.load %arg7[%c0_32, %c0_33, %c0_34] : memref<1x64x32xf32, #tpu.memory_space<vmem>>, vector<1x64x32xf32>
    %92 = vector.shape_cast %91 : vector<1x64x32xf32> to vector<64x32xf32>
    %93 = vector.shape_cast %90 : vector<64x32xf32> to vector<1x64x32xf32>
    tpu.vector_store %arg7[%c0_32, %c0_33, %c0_34], %93 {strides = array<i32>} : memref<1x64x32xf32, #tpu.memory_space<vmem>>, vector<1x64x32xf32>,
    return
  }
  func.func @transform_0(%arg0: i32, %arg1: i32) -> (i32, i32, i32) {
    %c0_i32 = arith.constant 0 : i32
    %c0_i32_0 = arith.constant 0 : i32
    return %arg0, %arg1, %c0_i32 : i32, i32, i32
  }
  func.func @transform_1(%arg0: i32, %arg1: i32) -> (i32, i32, i32) {
    %c0_i32 = arith.constant 0 : i32
    %c0_i32_0 = arith.constant 0 : i32
    return %arg0, %arg1, %c0_i32 : i32, i32, i32
  }
  func.func @transform_2(%arg0: i32, %arg1: i32) -> (i32, i32, i32) {
    %c0_i32 = arith.constant 0 : i32
    %c0_i32_0 = arith.constant 0 : i32
    %c0_i32_1 = arith.constant 0 : i32
    return %arg0, %c0_i32, %c0_i32_0 : i32, i32, i32
  }
  func.func @transform_3(%arg0: i32, %arg1: i32) -> (i32, i32) {
    %c0_i32 = arith.constant 0 : i32
    %c0_i32_0 = arith.constant 0 : i32
    %c0_i32_1 = arith.constant 0 : i32
    return %c0_i32, %c0_i32_0 : i32, i32
  }
  func.func @transform_4(%arg0: i32, %arg1: i32) -> (i32, i32) {
    %c0_i32 = arith.constant 0 : i32
    %c0_i32_0 = arith.constant 0 : i32
    %c0_i32_1 = arith.constant 0 : i32
    return %c0_i32, %c0_i32_0 : i32, i32
  }
  func.func @transform_5(%arg0: i32, %arg1: i32) -> (i32, i32, i32) {
    %c0_i32 = arith.constant 0 : i32
    %c0_i32_0 = arith.constant 0 : i32
    return %arg0, %arg1, %c0_i32 : i32, i32, i32
  }
}

</mosaic_0001>

<bundles_post_ra>
// kernel: gcn_layer.2
= control target key start
LH: loop header
LB: loop body
LE: loop exit
PB: predicated region body
PF: predicated region fallthrough
CT: control target
= control target key end

     0   :  { %12 = vsyncpa [#allocation3], 0  ;;  %s1729_s0 = inlined_call_operand.vmem [shape: f32[2,8,32], index: 0, kind: input, shape index: {}]   ;;  %s1730_s1 = inlined_call_operand.vmem [shape: s32[2,8,4], index: 1, kind: input, shape index: {}]   ;;  %s1731_s2 = inlined_call_operand.vmem [shape: f32[192,32], index: 2, kind: input, shape index: {}]   ;;  %s1732_s3 = inlined_call_operand.vmem [shape: f32[9,32], index: 3, kind: input, shape index: {}]   ;;  %s1733_s4 = inlined_call_operand.hbm [shape: f32[2,8,32], index: 4, kind: output, shape index: {0}]   ;;  %s1734_s5 = inlined_call_operand.vmem [shape: f32[2,8,32], index: 5, kind: output, shape index: {1}]   ;;  %s1735_s6 = inlined_call_operand.vmem [shape: f32[2,8,32], index: 6, kind: output, shape index: {2}]  }
   0x1   :  { %14 = vsyncpa [#allocation3 + $0x1], 0  ;;  %s1455_s21 = smov 0   ;;  %s1457_s22 = smov 0  }
   0x2   :  { %s1459_s23 = smov 0   ;;  %s1461_s24 = smov 0  }
   0x3 LB: > { %s1476_s25 = sadd.s32 4294967295, %s1411_s24   ;;  %s1156_s26 = sadd.s32 4294967294, %s1411_s24   ;;  %s1411_s24 = sphi %s1461_s24, %s1741_s24   ;;  %s1407_s23 = sphi %s1459_s23, %s1740_s23   ;;  %s1403_s22 = sphi %s1457_s22, %s1739_s22   ;;  %s1399_s21 = sphi %s1455_s21, %s1738_s21  }
   0x4   : > { %s1480_s27 = sadd.s32 1, %s1411_s24   ;;  %s121_s28 = sadd.s32 1, %s1407_s23 }
   0x5   : > { %s118_s29 = ssub.s32 %s1411_s24, %s1480_s27  ;;  %p131_p0 = scmp.ne.s32.totalorder %s1407_s23, %s1403_s22 }
   0x6   : > { %p119_p1 = scmp.eq.s32.totalorder %s118_s29, 0  ;;  %p132_p2 = scmp.eq.s32.totalorder %s1476_s25, 1 }
   0x7   : > { %p137_p3 = scmp.ne.s32.totalorder %s1403_s22, %s1399_s21  ;;  %p138_p4 = scmp.eq.s32.totalorder %s1156_s26, 1 }
   0x8   : > { %s1491_s30 = scalar_select %p119_p1, %s1407_s23, %s121_s28  }
   0x9   : > { %p1493_p5 = por %p132_p2, %p131_p0  ;;  %p1497_p6 = por %p138_p4, %p137_p3 }
   0xa   : > { %p1159_p7 = scmp.ge.s32.totalorder %s1411_s24, 1  ;;  %p228_p8 = scmp.lt.s32.totalorder %s1411_s24, 3 }
   0xc   : > { %p229_p9 = pnand %p1159_p7, %p228_p8 }
   0xd   : > { %p269_p10 = scmp.lt.s32.totalorder (!%p229_p9), %s1476_s25, 1  ;;  %s254_s19 = sand.u32 (!%p229_p9), 1, %s1403_s22  }
   0xe   : > { %232 = sbr.rel (%p229_p9) target bundleno = 1607 (0x647), region = 36  ;;  %s1160_s20 = sshll.u32 (!%p229_p9), %s254_s19, 3 }
   0xf   : > { %s256_s26 = scalar_lea.vmem (!%p229_p9), [#allocation2], %s1160_s20  ;;  %s1010_s12 = scalar_lea.sflag (!%p229_p9), [#allocation3], %s254_s19 }
  0x10   : > { %s1031_s28 = sshll.u32 (!%p229_p9), %s256_s26, 4  ;;  %s1419_s14 = smov (!%p229_p9), [#allocation2]   ;;  %s1032_s28 = int_to_ptr.vmem [resolvable:$true] %s1031_s28 }
  0x11   : > { %s1355_s15 = sshll.u32 (!%p229_p9), %s1419_s14, 4  ;;  %s1356_s15 = int_to_ptr.vmem [resolvable:$false] %s1355_s15 }
  0x12   : > { %p1358_p0 = scmp.lt.s32.totalorder (!%p229_p9), %s1032_s28, %s1356_s15 }
  0x13   : > { %v1413_v0 = vmov 0.0   ;;  %vm1414_vm0 = vmmov 0   ;;  %s270_s9 = scalar_select %p269_p10, %s1476_s25, 1  ;;  %vm313_vm1 = vcmask 261120   ;;  %v1415_v2 = vmov 1   ;;  %v290_v30 = vld [vmem:[%s1731_s2 + $0x18] sm:$0xff] }
  0x14   : > { %1217 = vmatprep.subr.mxu0 %v1413_v0  ;;  %1219 = vmatprep.mubr.msk.f32.mxu0 %vm1414_vm0, %v1413_v0  ;;  %v1416_v4 = vmov 0   ;;  %v1417_v5 = vmov 2   ;;  %v1418_v6 = vmov 3   ;;  %vm418_vm2 = vcmask 64512   ;;  %v289_v31 = vld [vmem:[%s1731_s2 + $0x10] sm:$0xff]  ;;  %v288_v32 = vld [vmem:[%s1731_s2 + $0x8] sm:$0xff] }
  0x15   : > { %1222 = vmatprep.subr.mxu1 %v1413_v0  ;;  %1224 = vmatprep.mubr.msk.f32.mxu1 %vm1414_vm0, %v1413_v0  ;;  %s1511_s10 = sshll.u32 %s270_s9, 3  ;;  %v388_v12 = vlaneseq  ;;  %v287_v33 = vld [vmem:[%s1731_s2] sm:$0xff]  ;;  %v294_v40 = vld [vmem:[%s1731_s2 + $0x38] sm:$0xff]  ;;  %v293_v41 = vld [vmem:[%s1731_s2 + $0x30] sm:$0xff] }
  0x16   : > { %s272_s13 = scalar_lea.vmem %s1729_s0, %s1511_s10  ;;  %s276_s16 = scalar_lea.vmem %s1730_s1, %s1511_s10  ;;  %1339 = vset.pattern.permute.xlu1 %v1415_v2  ;;  %1338 = vset.pattern.permute.xlu0 %v1416_v4  ;;  %v292_v42 = vld [vmem:[%s1731_s2 + $0x28] sm:$0xff]  ;;  %v291_v43 = vld [vmem:[%s1731_s2 + $0x20] sm:$0xff]  ;;  %v298_v59 = vld [vmem:[%s1731_s2 + $0x58] sm:$0xff] }
  0x17   : > { %v1517_v1 = vld [vmem:[%s272_s13] sm:$0xff]  ;;  %v389_v17 = vand.u32 127, %v388_v12  ;;  %v1581_v44 = vshrl.u32 %v388_v12, 7  ;;  %v302_v60 = vld [vmem:[%s1731_s2 + $0x78] sm:$0xff]  ;;  %v297_v61 = vld [vmem:[%s1731_s2 + $0x50] sm:$0xff]  ;;  %s284_s13 = scalar_lea.vmem %s1735_s6, %s1511_s10  ;;  %s280_s18 = scalar_lea.vmem %s1734_s5, %s1511_s10 }
  0x18   : > { %1218 = vmatpush3.xpose.msk.msra.mxu0 %vm313_vm1, %v1517_v1  ;;  %1223 = vmatpush3.msra.mxu1 %v1517_v1  ;;  %v286_v3 = vld [vmem:[%s276_s16] sm:$0xff]  ;;  %v296_v4 = vld [vmem:[%s1731_s2 + $0x48] sm:$0xff]  ;;  %s1180_s10 = sshll.u32 %s1476_s25, 7  ;;  %s1357_s25 = scalar_lea.vmem %s1356_s15, 256 }
  0x19   : > { %1227 = vmatprep.subr.mxu1 %v1413_v0  ;;  %1238 = vmatprep.subr.mxu0 %v1413_v0  ;;  %v507_v45 = vsub.s32 0, %v1581_v44  ;;  %v1587_v46 = vld [vmem:[%s1732_s3] sm:$0xff]  ;;  %v610_v62 = vsub.s32 3, %v1581_v44  ;;  %s1029_s11 = scalar_lea.hbm %s1733_s4, %s1180_s10 }
  0x1a   : > { %398 = vperm.xlu1 %1339, %v286_v3  }
  0x1b   : > { %1220 = vmatmul.mubr.msk.f32.vlgmr.msra.gmra.mxu0 %vm313_vm1, %v1517_v1  ;;  %v508_v47 = vrot.slane %v1587_v46, %v507_v45  ;;  %v611_v63 = vrot.slane %v1587_v46, %v610_v62 }
  0x1c   : > { %1246 = vmatprep.mubr.msk.f32.mxu0 %vm1414_vm0, %v1413_v0  ;;  %1239 = vmatpush3.msra.mxu0 %v294_v40 }
  0x1d   : > { %1240 = vmatprep.subr.mxu0 %v1413_v0 }
  0x1e   : > { %1340 = vset.pattern.permute.xlu1 %v1417_v5  ;;  %1241 = vmatpush3.msra.mxu0 %v293_v41  ;;  %v300_v5 = vld [vmem:[%s1731_s2 + $0x68] sm:$0xff] }
  0x1f   : > { %405 = vperm.xlu1 %1340, %v286_v3   ;;  %1242 = vmatprep.subr.mxu0 %v1413_v0 }
  0x20   : > { %1243 = vmatpush3.msra.mxu0 %v292_v42 }
  0x21   : > { %1244 = vmatprep.subr.mxu0 %v1413_v0 }
  0x22   : > { %1245 = vmatpush3.msra.mxu0 %v291_v43  ;;  %v861_v43 = vsub.s32 7, %v1581_v44 }
  0x23   : > { %1341 = vset.pattern.permute.xlu1 %v1418_v6  ;;  %1247 = vmatmul.mubr.msk.f32.vlgmr.msra.gmra.mxu0 %vm313_vm1, %v1517_v1 }
  0x24   : > { %412 = vperm.xlu1 %1341, %v286_v3   ;;  %1260 = vmatprep.subr.mxu0 %v1413_v0 }
  0x25   : > { %1268 = vmatprep.mubr.msk.f32.mxu0 %vm1414_vm0, %v1413_v0  ;;  %1261 = vmatpush3.msra.mxu0 %v298_v59 }
  0x26   : > { %1262 = vmatprep.subr.mxu0 %v1413_v0 }
  0x27   : > { %1263 = vmatpush3.msra.mxu0 %v297_v61 }
  0x28   : > { %1264 = vmatprep.subr.mxu0 %v1413_v0 }
  0x29   : > { %1265 = vmatpush3.msra.mxu0 %v296_v4 }
  0x2a   : > { %1266 = vmatprep.subr.mxu0 %v1413_v0 }
  0x95   : > { %v399_v11 = vpop.permute.xlu1 %398 }
  0x96   : > { %vm400_vm3 = vcmp.eq.s32.totalorder %v399_v11, %v389_v17 }
  0x97   : > { %v1168_v20 = vsel %vm400_vm3, 1.0, %v1413_v0 }
  0x9a   : > { %v406_v15 = vpop.permute.xlu1 %405 }
  0x9b   : > { %vm407_vm4 = vcmp.eq.s32.totalorder %v406_v15, %v389_v17 }
  0x9c   : > { %v1169_v21 = vsel %vm407_vm4, 1.0, %v1413_v0 }
  0x9f   : > { %v413_v19 = vpop.permute.xlu1 %412 }
  0xa0   : > { %vm414_vm6 = vcmp.eq.s32.totalorder %v413_v19, %v389_v17 }
  0xa1   : > { %v1170_v25 = vsel %vm414_vm6, 1.0, %v1413_v0 }
  0xdb   : > { %v383_v7 = vpop.f32.mrf.mxu0 }
  0xdc   : > { %v387_v8 = vmul.f32 0.17677669, %v383_v7 }
  0xdd   : > { %v1221_v9 = vpop.f32.mrf.mxu0 }
  0xde   : > { %v419_v10 = vsel %vm418_vm2, %v387_v8, -inf  ;;  %v299_v9 = vld [vmem:[%s1731_s2 + $0x60] sm:$0xff] }
  0xdf   : > { %420 = vmax.xlane.f32.xlu0 %v419_v10 }
  0xe3   : > { %v678_v2 = vpop.f32.mrf.mxu0 }
  0xe4   : > { %v679_v7 = vadd.f32 %v678_v2, %v611_v63 }
  0xf5   : > { %391 = vperm.xlu0 %1338, %v286_v3   ;;  %v301_v3 = vld [vmem:[%s1731_s2 + $0x70] sm:$0xff] }
  0xf9   : > { %1342 = vset.pattern.permute.xlu0 %v1418_v6  ;;  %v295_v6 = vld [vmem:[%s1731_s2 + $0x40] sm:$0xff] }
  0xfa   : > { %1267 = vmatpush3.msra.mxu0 %v295_v6 }
  0xfb   : > { %1269 = vmatmul.mubr.msk.f32.vlgmr.msra.gmra.mxu0 %vm313_vm1, %v679_v7  ;;  %1282 = vmatprep.subr.mxu0 %v1413_v0 }
  0xfc   : > { %1290 = vmatprep.mubr.msk.f32.mxu0 %vm1414_vm0, %v1413_v0 }
 0x168   : > { %v421_v13 = vpop.xlane.xlu0 %420 }
 0x169   : > { %v422_v14 = vsub.f32 %v387_v8, %v421_v13  ;;  %v1248_v8 = vpop.f32.mrf.mxu0  ;;  %v600_v13 = vsub.s32 1, %v1581_v44 }
 0x16b   : > { %v423_v16 = vmul.f32 1.442695, %v422_v14  ;;  %v605_v14 = vsub.s32 2, %v1581_v44  ;;  %v601_v15 = vrot.slane %v1587_v46, %v600_v13 }
 0x16d   : > { %1343 = vpow2.f32 %v423_v16 }
 0x170   : > { %v392_v18 = vpop.permute.xlu0 %391 }
 0x171   : > { %vm393_vm5 = vcmp.eq.s32.totalorder %v392_v18, %v389_v17  ;;  %v606_v18 = vrot.slane %v1587_v46, %v605_v14 }
 0x172   : > { %v1167_v22 = vsel %vm393_vm5, 1.0, %v1413_v0 }
 0x173   : > { %v403_v23 = vadd.f32 %v1168_v20, %v1167_v22 }
 0x175   : > { %v410_v24 = vadd.f32 %v1169_v21, %v403_v23  ;;  %v306_v23 = vld [vmem:[%s1731_s2 + $0x98] sm:$0xff] }
 0x177   : > { %v417_v26 = vadd.f32 %v1170_v25, %v410_v24  ;;  %v310_v24 = vld [vmem:[%s1731_s2 + $0xb8] sm:$0xff]  ;;  %v305_v25 = vld [vmem:[%s1731_s2 + $0x90] sm:$0xff] }
 0x178   : > { %1283 = vmatpush3.msra.mxu0 %v310_v24 }
 0x179   : > { %1284 = vmatprep.subr.mxu0 %v1413_v0 }
 0x17a   : > { %v1344_v27 = vpop.eup %1343 }
 0x17b   : > { %v425_v28 = vmul.f32 %v1344_v27, %v417_v26  ;;  %v309_v26 = vld [vmem:[%s1731_s2 + $0xb0] sm:$0xff]  ;;  %v304_v27 = vld [vmem:[%s1731_s2 + $0x88] sm:$0xff] }
 0x17c   : > { %1285 = vmatpush3.msra.mxu0 %v309_v26 }
 0x17d   : > { %1225 = vmatmul.mubr.msk.f32.vlgmr.msra.gmra.mxu1 %vm418_vm2, %v425_v28  ;;  %v426_v29 = vsel %vm418_vm2, %v425_v28, 0.0  ;;  %v308_v28 = vld [vmem:[%s1731_s2 + $0xa8] sm:$0xff]  ;;  %1286 = vmatprep.subr.mxu0 %v1413_v0 }
 0x17e   : > { %427 = vadd.xlane.f32.xlu1 %v426_v29  ;;  %1235 = vmatprep.mubr.msk.f32.mxu1 %vm1414_vm0, %v1413_v0  ;;  %v303_v29 = vld [vmem:[%s1731_s2 + $0x80] sm:$0xff] }
 0x17f   : > { %1228 = vmatpush3.msra.mxu1 %v290_v30  ;;  %v307_v30 = vld [vmem:[%s1731_s2 + $0xa0] sm:$0xff]  ;;  %1287 = vmatpush3.msra.mxu0 %v308_v28 }
 0x180   : > { %1229 = vmatprep.subr.mxu1 %v1413_v0  ;;  %1288 = vmatprep.subr.mxu0 %v1413_v0 }
 0x181   : > { %1230 = vmatpush3.msra.mxu1 %v289_v31  ;;  %1289 = vmatpush3.msra.mxu0 %v307_v30  ;;  %v830_v31 = vsub.s32 4, %v1581_v44 }
 0x182   : > { %1231 = vmatprep.subr.mxu1 %v1413_v0  ;;  %1291 = vmatmul.mubr.msk.f32.vlgmr.msra.gmra.mxu0 %vm313_vm1, %v1517_v1 }
 0x183   : > { %1232 = vmatpush3.msra.mxu1 %v288_v32  ;;  %v831_v32 = vrot.slane %v1587_v46, %v830_v31 }
 0x184   : > { %1233 = vmatprep.subr.mxu1 %v1413_v0 }
 0x185   : > { %1234 = vmatpush3.msra.mxu1 %v287_v33 }
 0x186   : > { %1249 = vmatprep.subr.mxu1 %v1413_v0 }
 0x1bb   : > { %v824_v21 = vpop.f32.mrf.mxu0 }
 0x1bd   : > { %v1270_v22 = vpop.f32.mrf.mxu0 }
 0x207   : > { %v428_v34 = vpop.xlane.xlu1 %427 }
 0x208   : > { %1345 = vrcp.f32 %v428_v34 }
 0x215   : > { %v1346_v35 = vpop.eup %1345 }
 0x23d   : > { %v498_v36 = vpop.f32.mrf.mxu1 }
 0x23e   : > { %v503_v37 = vmul.f32 %v1346_v35, %v498_v36 }
 0x23f   : > { %v1226_v38 = vpop.f32.mrf.mxu1 }
 0x240   : > { %v504_v39 = vadd.f32 %v503_v37, %v1517_v1 }
 0x242   : > { %1236 = vmatmul.mubr.msk.f32.vlgmr.msra.gmra.mxu1 %vm313_vm1, %v504_v39 }
 0x243   : > { %1257 = vmatprep.mubr.msk.f32.mxu1 %vm1414_vm0, %v1413_v0  ;;  %1250 = vmatpush3.msra.mxu1 %v302_v60 }
 0x244   : > { %1251 = vmatprep.subr.mxu1 %v1413_v0 }
 0x245   : > { %1252 = vmatpush3.msra.mxu1 %v301_v3 }
 0x246   : > { %1253 = vmatprep.subr.mxu1 %v1413_v0 }
 0x247   : > { %1254 = vmatpush3.msra.mxu1 %v300_v5 }
 0x248   : > { %1255 = vmatprep.subr.mxu1 %v1413_v0 }
 0x249   : > { %1256 = vmatpush3.msra.mxu1 %v299_v9 }
 0x24a   : > { %1271 = vmatprep.subr.mxu1 %v1413_v0 }
 0x302   : > { %v578_v48 = vpop.f32.mrf.mxu1 }
 0x303   : > { %v579_v49 = vadd.f32 %v578_v48, %v508_v47  ;;  %v1177_v47 = vld [vmem:[%s1732_s3 + $0x8] ss:$0 sm:$0xff]  ;;  %v1004_v48 = vpop.f32.mrf.mxu0 }
 0x304   : > { %v1237_v50 = vpop.f32.mrf.mxu1 }
 0x305   : > { %v582_v51 = vmax.f32 %v579_v49, 0.0  ;;  %v1005_v49 = vadd.f32 %v1177_v47, %v1004_v48  ;;  %v862_v50 = vrot.slane %v1587_v46, %v861_v43 }
 0x307   : > { %v583_v52 = vadd.f32 %v582_v51, %v1517_v1  ;;  %1008 = vst.msk [vmem:[%s284_s13] sm:$0xff] %vm313_vm1, %v1005_v49  ;;  %s1351_s13 = scalar_lea.vmem %s1032_s28, 128 }
 0x308   : > { %p1352_p11 = scmp.ne.s32.totalorder %s1032_s28, %s1351_s13  ;;  %p1359_p1 = scmp.lt.s32.totalorder %s1357_s25, %s1351_s13 }
 0x309   : > { %v584_v53 = vsel %vm313_vm1, %v583_v52, 0.0 }
 0x30a   : > { %585 = vadd.xlane.f32.xlu0 %v584_v53  ;;  %p1353_p12 = pnand %p1352_p11, %p1493_p5  ;;  %p1360_p2 = por %p1359_p1, %p1358_p0 }
 0x30c   : > { %p1354_p13 = pneg %p1353_p12 }
 0x30e   : > { %p1361_p3 = pnand %p1360_p2, %p1354_p13 }
 0x393   : > { %v586_v54 = vpop.xlane.xlu0 %585 }
 0x394   : > { %v588_v55 = vmul.f32 0.03125, %v586_v54 }
 0x396   : > { %v589_v56 = vsub.f32 %v583_v52, %v588_v55  ;;  %v1292_v52 = vpop.f32.mrf.mxu0 }
 0x398   : > { %v590_v57 = vmul.f32 %v589_v56, %v589_v56 }
 0x39a   : > { %v591_v58 = vsel %vm313_vm1, %v590_v57, 0.0  ;;  %v850_v57 = vsub.s32 5, %v1581_v44 }
 0x39b   : > { %592 = vadd.xlane.f32.xlu1 %v591_v58  ;;  %v855_v58 = vsub.s32 6, %v1581_v44 }
 0x39c   : > { %v851_v59 = vrot.slane %v1587_v46, %v850_v57 }
 0x39d   : > { %v856_v62 = vrot.slane %v1587_v46, %v855_v58 }
 0x424   : > { %v593_v10 = vpop.xlane.xlu1 %592 }
 0x425   : > { %v594_v11 = vmul.f32 0.03125, %v593_v10 }
 0x427   : > { %v595_v12 = vadd.f32 1e-05, %v594_v11 }
 0x429   : > { %1347 = vrsqrt.f32 %v595_v12 }
 0x436   : > { %v1348_v16 = vpop.eup %1347 }
 0x437   : > { %v597_v17 = vmul.f32 %v1348_v16, %v589_v56 }
 0x439   : > { %v602_v19 = vmul.f32 %v601_v15, %v597_v17 }
 0x43b   : > { %v607_v20 = vadd.f32 %v606_v18, %v602_v19 }
 0x43d   : > { %1258 = vmatmul.mubr.msk.f32.vlgmr.msra.gmra.mxu1 %vm313_vm1, %v607_v20 }
 0x43e   : > { %1279 = vmatprep.mubr.msk.f32.mxu1 %vm1414_vm0, %v1413_v0  ;;  %1272 = vmatpush3.msra.mxu1 %v306_v23 }
 0x43f   : > { %1273 = vmatprep.subr.mxu1 %v1413_v0 }
 0x440   : > { %1274 = vmatpush3.msra.mxu1 %v305_v25 }
 0x441   : > { %1275 = vmatprep.subr.mxu1 %v1413_v0 }
 0x442   : > { %1276 = vmatpush3.msra.mxu1 %v304_v27 }
 0x443   : > { %1277 = vmatprep.subr.mxu1 %v1413_v0 }
 0x444   : > { %1278 = vmatpush3.msra.mxu1 %v303_v29 }
 0x445   : > { %1280 = vmatmul.mubr.msk.f32.vlgmr.msra.gmra.mxu1 %vm313_vm1, %v1517_v1 }
 0x4fd   : > { %v751_v33 = vpop.f32.mrf.mxu1 }
 0x4fe   : > { %v825_v34 = vadd.f32 %v824_v21, %v751_v33 }
 0x4ff   : > { %v1259_v35 = vpop.f32.mrf.mxu1 }
 0x500   : > { %v832_v36 = vadd.f32 %v831_v32, %v825_v34 }
 0x502   : > { %v833_v37 = vmax.f32 %v832_v36, 0.0 }
 0x504   : > { %v834_v38 = vadd.f32 %v833_v37, %v607_v20 }
 0x505   : > { %v929_v45 = vpop.f32.mrf.mxu1 }
 0x506   : > { %v835_v0 = vsel %vm313_vm1, %v834_v38, 0.0  ;;  %v930_v53 = vadd.f32 %v929_v45, %v862_v50 }
 0x507   : > { %836 = vadd.xlane.f32.xlu1 %v835_v0  ;;  %v1281_v51 = vpop.f32.mrf.mxu1 }
 0x508   : > { %933 = vst.msk [vmem:[%s280_s18] sm:$0xff] %vm313_vm1, %v930_v53 }
 0x590   : > { %v837_v39 = vpop.xlane.xlu1 %836 }
 0x591   : > { %v838_v40 = vmul.f32 0.03125, %v837_v39 }
 0x593   : > { %v839_v41 = vsub.f32 %v834_v38, %v838_v40 }
 0x595   : > { %v840_v42 = vmul.f32 %v839_v41, %v839_v41 }
 0x597   : > { %v841_v1 = vsel %vm313_vm1, %v840_v42, 0.0 }
 0x598   : > { %842 = vadd.xlane.f32.xlu1 %v841_v1 }
 0x621   : > { %v843_v54 = vpop.xlane.xlu1 %842 }
 0x622   : > { %v844_v55 = vmul.f32 0.03125, %v843_v54 }
 0x624   : > { %v845_v56 = vadd.f32 1e-05, %v844_v55 }
 0x626   : > { %1349 = vrsqrt.f32 %v845_v56 }
 0x633   : > { %v1350_v60 = vpop.eup %1349 }
 0x634   : > { %v847_v61 = vmul.f32 %v1350_v60, %v839_v41 }
 0x636   : > { %v852_v63 = vmul.f32 %v851_v59, %v847_v61 }
 0x638   : > { %v857_v2 = vadd.f32 %v856_v62, %v852_v63 }
 0x63a   : > { %858 = vst.msk [vmem:[%s256_s26] sm:$0xff] %vm313_vm1, %v857_v2 }
 0x63b   : > { %1364 = shalt.err (!%p1361_p3)
}
 0x63c   : > { %s1365_s16 = scalar_lea.hbm %s1029_s11, 128  ;;  %s1369_s19 = scalar_lea.hbm %s1733_s4, 256 }
 0x63d   : > { %p1366_p4 = scmp.ne.s32.totalorder %s1029_s11, %s1365_s16  ;;  %p1370_p9 = scmp.lt.s32.totalorder %s1029_s11, %s1733_s4 }
 0x63e   : > { %p1371_p10 = scmp.lt.s32.totalorder %s1369_s19, %s1365_s16 }
 0x63f   : > { %p1367_p7 = pnand %p1366_p4, %p1493_p5 }
 0x640   : > { %p1372_p11 = por %p1371_p10, %p1370_p9 }
 0x641   : > { %p1368_p8 = pneg %p1367_p7 }
 0x643   : > { %p1373_p12 = pnand %p1372_p11, %p1368_p8 }
 0x645   : > { %1376 = shalt.err (!%p1373_p12)
}
 0x646   : > { %1293 = dma.vmem_to_hbm [thread:$0]  (%p1493_p5), %s1032_s28, 128, %s1029_s11, %s1010_s12  }
 0x647 PF: > { %p1299_p13 = scmp.ge.s32.totalorder %s1411_s24, 2  ;;  %s1049_s26 = sand.u32 1, %s1399_s21  }
 0x648   : > { %s1050_s29 = scalar_lea.sflag [#allocation3], %s1049_s26 }
 0x649   : > { %p1296_p0 = pnand %p1299_p13, %p1497_p6 }
 0x64b   : > { %p1297_p1 = pneg %p1296_p0 }
 0x64d   : > { %1394 = dma.done.wait (%p1297_p1), %s1050_s29, 128  }
 0x64e   : > { %1396 = vsyncadd (%p1297_p1), %s1050_s29, 4294967168  ;;  %p17_p2 = scmp.ge.s32.totalorder %s1480_s27, 4   ;;  %s1738_s21 = smov %s1403_s22 }
 0x64f   : > { %s1739_s22 = smov %s1407_s23  ;;  %s1740_s23 = smov %s1491_s30 }
 0x650   : > { %s1741_s24 = smov %s1480_s27  ;;  %19 = sbr.rel (!%p17_p2) target bundleno = 3 (0x3), region = 98 }
 0x655   :  { %1069 = vsyncpa [#allocation3], 1 }
 0x656   :  { %1071 = vsyncpa [#allocation3 + $0x1], 1 }

// kernel: gcn_layer.3
= control target key start
LH: loop header
LB: loop body
LE: loop exit
PB: predicated region body
PF: predicated region fallthrough
CT: control target
= control target key end

     0   :  { %10 = vsyncpa [#allocation3], 0  ;;  %s2365_s0 = inlined_call_operand.vmem [shape: f32[2,64,32], index: 0, kind: input, shape index: {}]   ;;  %s2366_s1 = inlined_call_operand.vmem [shape: f32[2,8,32], index: 1, kind: input, shape index: {}]   ;;  %s2367_s2 = inlined_call_operand.vmem [shape: f32[2,8,32], index: 2, kind: input, shape index: {}]   ;;  %s2368_s3 = inlined_call_operand.vmem [shape: f32[160,32], index: 3, kind: input, shape index: {}]   ;;  %s2369_s4 = inlined_call_operand.vmem [shape: f32[7,32], index: 4, kind: input, shape index: {}]   ;;  %s2370_s5 = inlined_call_operand.hbm [shape: f32[2,64,32], index: 5, kind: output, shape index: {}]  }
   0x1   :  { %12 = vsyncpa [#allocation3 + $0x1], 0  ;;  %s1917_s18 = smov 0   ;;  %s1919_s19 = smov 0  }
   0x2   :  { %s1921_s20 = smov 0   ;;  %s1923_s21 = smov 0  }
   0x3   :  { %s1925_s22 = smov 0   ;;  %s1927_s23 = smov 0  }
   0x4 LB: > { %s1489_s24 = sadd.s32 4294967295, %s1881_s23   ;;  %s1490_s25 = sadd.s32 4294967294, %s1881_s23   ;;  %s1881_s23 = sphi %s1927_s23, %s18_s23   ;;  %s1877_s22 = sphi %s1925_s22, %s2377_s22   ;;  %s1873_s21 = sphi %s1923_s21, %s2376_s21   ;;  %s1869_s20 = sphi %s1921_s20, %s2375_s20   ;;  %s1865_s19 = sphi %s1919_s19, %s2374_s19   ;;  %s1861_s18 = sphi %s1917_s18, %s2373_s18  }
   0x5   : > { %s30_s26 = sadd.s32 1, %s1877_s22  ;;  %s163_s27 = sadd.s32 1, %s1869_s20 }
   0x6   : > { %p32_p0 = scmp.ge.s32.totalorder %s30_s26, 2  ;;  %p173_p1 = scmp.ne.s32.totalorder %s1869_s20, %s1865_s19 }
   0x7   : > { %p174_p2 = scmp.eq.s32.totalorder %s1489_s24, 1  ;;  %p179_p3 = scmp.ne.s32.totalorder %s1865_s19, %s1861_s18 }
   0x8   : > { %s2379_s26 = smov (%p32_p0, %s30_s26), 0  ;;  %p180_p5 = scmp.eq.s32.totalorder %s1490_s25, 1 }
   0x9   : > { %p1957_p4 = por %p174_p2, %p173_p1  ;;  %s158_s29 = ssub.s32 %s1877_s22, %s2379_s26 }
   0xa   : > { %p1493_p6 = scmp.ge.s32.totalorder %s1881_s23, 1  ;;  %p161_p7 = scmp.eq.s32.totalorder %s158_s29, 0 }
   0xb   : > { %p1964_p8 = por %p180_p5, %p179_p3  ;;  %p234_p9 = scmp.lt.s32.totalorder %s1881_s23, 3 }
   0xc   : > { %s1970_s6 = scalar_select %p161_p7, %s1869_s20, %s163_s27  }
   0xd   : > { %p235_p10 = pnand %p1493_p6, %p234_p9 }
   0xe   : > { %p278_p11 = scmp.lt.s32.totalorder (!%p235_p10), %s1873_s21, 1  ;;  %s1884_s10 = smov (!%p235_p10), [#allocation2]  }
   0xf   : > { %238 = sbr.rel (%p235_p10) target bundleno = 1280 (0x500), region = 40  ;;  %s1809_s11 = sshll.u32 (!%p235_p10), %s1884_s10, 4  ;;  %s1810_s11 = int_to_ptr.vmem [resolvable:$false] %s1809_s11 }
  0x10   : > { %s1811_s12 = scalar_lea.vmem (!%p235_p10), %s1810_s11, 2048 }
  0x14   : > { %v310_v0 = vld [vmem:[%s2368_s3 + $0x18] sm:$0xff]  ;;  %v309_v1 = vld [vmem:[%s2368_s3 + $0x10] sm:$0xff]  ;;  %v308_v2 = vld [vmem:[%s2368_s3 + $0x8] sm:$0xff]  ;;  %s1983_s13 = scalar_select %p278_p11, %s1873_s21, 1  ;;  %vm420_vm0 = vcmask 261120   ;;  %v335_v18 = vlaneseq }
  0x15   : > { %1606 = vmatprep.subr.mxu0 %v310_v0  ;;  %1706 = vmatprep.subr.mxu1 %v310_v0  ;;  %v307_v3 = vld [vmem:[%s2368_s3] sm:$0xff]  ;;  %v314_v9 = vld [vmem:[%s2368_s3 + $0x38] sm:$0xff]  ;;  %v313_v13 = vld [vmem:[%s2368_s3 + $0x30] sm:$0xff]  ;;  %v1883_v16 = vmov 1966171168  }
  0x16   : > { %1607 = vmatpush3.msra.mxu0 %v310_v0  ;;  %1710 = vmatpush3.msra.mxu1 %v310_v0  ;;  %s1544_s16 = sshll.u32 %s1983_s13, 6  ;;  %v312_v14 = vld [vmem:[%s2368_s3 + $0x28] sm:$0xff]  ;;  %v311_v15 = vld [vmem:[%s2368_s3 + $0x20] sm:$0xff]  ;;  %v333_v17 = vunpack.c.l.s4 %v1883_v16  ;;  %s1497_s14 = sshll.u32 %s1983_s13, 3  ;;  %v2039_v20 = vshrl.u32 %v335_v18, 7 }
  0x17   : > { %1608 = vmatprep.subr.mxu0 %v309_v1  ;;  %1707 = vmatprep.subr.mxu1 %v309_v1  ;;  %s285_s25 = scalar_lea.vmem %s2365_s0, %s1544_s16  ;;  %s293_s17 = scalar_lea.vmem %s2366_s1, %s1497_s14  ;;  %v316_v16 = vld [vmem:[%s2368_s3 + $0x48] sm:$0xff]  ;;  %v2096_v18 = vld [vmem:[%s2369_s4] sm:$0x7f] }
  0x18   : > { %1609 = vmatpush3.msra.mxu0 %v309_v1  ;;  %1711 = vmatpush3.msra.mxu1 %v309_v1  ;;  %v1992_v4 = vld [vmem:[%s285_s25] sm:$0xff]  ;;  %v1994_v5 = vld [vmem:[%s285_s25 + $0x8] sm:$0xff]  ;;  %v1998_v6 = vld [vmem:[%s285_s25 + $0x10] sm:$0xff]  ;;  %v334_v19 = vunpack.c.0.s8 %v333_v17  ;;  %v2046_v28 = vsub.s32 0, %v2039_v20 }
  0x19   : > { %1610 = vmatprep.subr.mxu0 %v308_v2  ;;  %1708 = vmatprep.subr.mxu1 %v308_v2  ;;  %v2000_v7 = vld [vmem:[%s285_s25 + $0x20] sm:$0xff]  ;;  %v2002_v8 = vld [vmem:[%s285_s25 + $0x28] sm:$0xff]  ;;  %v2009_v10 = vld [vmem:[%s285_s25 + $0x30] sm:$0xff] }
  0x1a   : > { %1611 = vmatpush3.msra.mxu0 %v308_v2  ;;  %1712 = vmatpush3.msra.mxu1 %v308_v2  ;;  %v2013_v11 = vld [vmem:[%s285_s25 + $0x18] sm:$0xff]  ;;  %v337_v21 = vsub.s32 %v334_v19, %v2039_v20  ;;  %v328_v22 = vld [vmem:[%s293_s17] sm:$0xff]  ;;  %v561_v19 = vrot.slane %v2096_v18, %v2046_v28  ;;  %s274_s17 = sand.u32 1, %s1865_s19  }
  0x1b   : > { %1612 = vmatprep.subr.mxu0 %v307_v3  ;;  %1614 = vmatprep.mubr.msk.f32.mxu0 %vm420_vm0, %v1992_v4  ;;  %v2021_v12 = vld [vmem:[%s285_s25 + $0x38] sm:$0xff]  ;;  %v331_v24 = vcombine.high %v328_v22, %v328_v22  ;;  %s297_s25 = scalar_lea.vmem %s2367_s2, %s1497_s14  ;;  %v315_v17 = vld [vmem:[%s2368_s3 + $0x40] sm:$0xff]  ;;  %s1494_s13 = sshll.u32 %s274_s17, 6 }
  0x1c   : > { %1613 = vmatpush3.msra.mxu0 %v307_v3  ;;  %1709 = vmatprep.subr.mxu1 %v307_v3  ;;  %v338_v23 = vrot.slane %v328_v22, %v337_v21  ;;  %v329_v44 = vld [vmem:[%s297_s25] sm:$0xff]  ;;  %s2286_s24 = scalar_lea.vmem [#allocation2], %s1494_s13  ;;  %s1545_s25 = sshll.u32 %s1873_s21, 10 }
  0x1d   : > { %1615 = vmatmul.mubr.msk.f32.vlgmr.msra.gmra.mxu0 %vm420_vm0, %v1994_v5  ;;  %1713 = vmatpush3.msra.mxu1 %v307_v3  ;;  %v345_v26 = vrot.slane %v331_v24, %v337_v21  ;;  %s1383_s27 = sshll.u32 %s2286_s24, 4  ;;  %s2312_s8 = scalar_lea.hbm %s2370_s5, %s1545_s25  ;;  %s2314_s27 = int_to_ptr.vmem [resolvable:$true] %s1383_s27 }
  0x1e   : > { %1617 = vmatprep.mubr.msk.f32.mxu0 %vm420_vm0, %v1998_v6  ;;  %1620 = vmatprep.mubr.msk.f32.mxu1 %vm420_vm0, %v2000_v7  ;;  %v346_v25 = vcombine.high %v338_v23, %v338_v23  ;;  %v354_v29 = vrot.slane %v338_v23, %v337_v21  ;;  %s2320_s21 = scalar_lea.sflag [#allocation3], %s274_s17  ;;  %s1805_s9 = scalar_lea.vmem %s2314_s27, 1024 }
  0x1f   : > { %1621 = vmatmul.mubr.msk.f32.vlgmr.msra.gmra.mxu1 %vm420_vm0, %v2002_v8  ;;  %1626 = vmatprep.subr.mxu1 %v314_v9  ;;  %v347_v30 = vcombine.high %v345_v26, %v345_v26  ;;  %v361_v31 = vrot.slane %v345_v26, %v337_v21  ;;  %p1806_p12 = scmp.ne.s32.totalorder %s2314_s27, %s1805_s9  ;;  %p1812_p1 = scmp.lt.s32.totalorder %s2314_s27, %s1810_s11 }
  0x20   : > { %1623 = vmatprep.mubr.msk.f32.mxu1 %vm420_vm0, %v2009_v10  ;;  %1627 = vmatpush3.msra.mxu1 %v314_v9  ;;  %v368_v27 = vrot.slane %v346_v25, %v337_v21  ;;  %v383_v34 = vrot.slane %v354_v29, %v2046_v28  ;;  %v376_v35 = vcombine.high %v354_v29, %v354_v29  ;;  %p1813_p2 = scmp.lt.s32.totalorder %s1811_s12, %s1805_s9 }
  0x21   : > { %1618 = vmatmul.mubr.msk.f32.gmra.mxu0 %vm420_vm0, %v2013_v11  ;;  %1628 = vmatprep.subr.mxu1 %v313_v13  ;;  %v375_v37 = vrot.slane %v347_v30, %v337_v21  ;;  %v399_v38 = vrot.slane %v361_v31, %v2046_v28  ;;  %v377_v39 = vcombine.high %v361_v31, %v361_v31  ;;  %p1807_p13 = pnand %p1806_p12, %p1957_p4 }
  0x22   : > { %1654 = vmatprep.mubr.msk.f32.mxu0 %vm420_vm0, %v1992_v4  ;;  %1629 = vmatpush3.msra.mxu1 %v313_v13  ;;  %v387_v32 = vrot.slane %v368_v27, %v2046_v28  ;;  %v378_v33 = vcombine.high %v368_v27, %v368_v27  ;;  %v391_v46 = vrot.slane %v376_v35, %v2046_v28  ;;  %p1814_p3 = por %p1813_p2, %p1812_p1 }
  0x23   : > { %1624 = vmatmul.mubr.msk.f32.gmra.mxu1 %vm420_vm0, %v2021_v12  ;;  %1630 = vmatprep.subr.mxu1 %v312_v14  ;;  %v403_v48 = vrot.slane %v375_v37, %v2046_v28  ;;  %v379_v50 = vcombine.high %v375_v37, %v375_v37  ;;  %v407_v53 = vrot.slane %v377_v39, %v2046_v28  ;;  %p1808_p0 = pneg %p1807_p13 }
  0x24   : > { %1631 = vmatpush3.msra.mxu1 %v312_v14  ;;  %v395_v42 = vrot.slane %v378_v33, %v2046_v28  ;;  %v318_v14 = vld [vmem:[%s2368_s3 + $0x58] sm:$0xff] }
  0x25   : > { %1632 = vmatprep.subr.mxu1 %v311_v15  ;;  %v411_v60 = vrot.slane %v379_v50, %v2046_v28  ;;  %1646 = vmatprep.subr.mxu0 %v318_v14  ;;  %p1815_p5 = pnand %p1814_p3, %p1808_p0 }
  0x26   : > { %1633 = vmatpush3.msra.mxu1 %v311_v15  ;;  %v317_v15 = vld [vmem:[%s2368_s3 + $0x50] sm:$0xff]  ;;  %1647 = vmatpush3.msra.mxu0 %v318_v14 }
  0x27   : > { %1648 = vmatprep.subr.mxu0 %v317_v15 }
  0x28   : > { %1649 = vmatpush3.msra.mxu0 %v317_v15 }
  0x29   : > { %1650 = vmatprep.subr.mxu0 %v316_v16 }
  0x2a   : > { %1651 = vmatpush3.msra.mxu0 %v316_v16 }
  0x2b   : > { %1652 = vmatprep.subr.mxu0 %v315_v17 }
  0x2c   : > { %1653 = vmatpush3.msra.mxu0 %v315_v17 }
  0x2d   : > { %1655 = vmatmul.mubr.msk.f32.vlgmr.msra.gmra.mxu0 %vm420_vm0, %v1994_v5 }
  0x2e   : > { %1657 = vmatprep.mubr.msk.f32.mxu0 %vm420_vm0, %v1998_v6 }
  0x31   : > { %1658 = vmatmul.mubr.msk.f32.gmra.mxu0 %vm420_vm0, %v2013_v11 }
  0x32   : > { %1660 = vmatprep.mubr.msk.f32.mxu0 %vm420_vm0, %v2000_v7 }
  0x35   : > { %1661 = vmatmul.mubr.msk.f32.gmra.mxu0 %vm420_vm0, %v2002_v8 }
  0x36   : > { %1663 = vmatprep.mubr.msk.f32.mxu0 %vm420_vm0, %v2009_v10 }
  0x39   : > { %1664 = vmatmul.mubr.msk.f32.gmra.mxu0 %vm420_vm0, %v2021_v12 }
  0xdd   : > { %v1616_v36 = vpop.f32.mrf.mxu0 }
  0xde   : > { %v517_v40 = vadd.f32 %v1616_v36, %v387_v32 }
  0xdf   : > { %v511_v41 = vpop.f32.mrf.mxu0  ;;  %v1622_v43 = vpop.f32.mrf.mxu1 }
  0xe0   : > { %v512_v45 = vadd.f32 %v511_v41, %v383_v34  ;;  %v551_v54 = vadd.f32 %v517_v40, %v329_v44  ;;  %v537_v59 = vadd.f32 %v1622_v43, %v403_v48 }
  0xe1   : > { %v1619_v47 = vpop.f32.mrf.mxu0  ;;  %v531_v49 = vpop.f32.mrf.mxu1 }
  0xe2   : > { %v550_v51 = vadd.f32 %v512_v45, %v329_v44  ;;  %v532_v52 = vadd.f32 %v531_v49, %v399_v38  ;;  %v527_v55 = vadd.f32 %v1619_v47, %v395_v42  ;;  %v555_v2 = vadd.f32 %v537_v59, %v329_v44 }
  0xe3   : > { %v521_v56 = vpop.f32.mrf.mxu0  ;;  %v1625_v57 = vpop.f32.mrf.mxu1 }
  0xe4   : > { %v522_v58 = vadd.f32 %v521_v56, %v391_v46  ;;  %1634 = vmatprep.mubr.msk.f32.mxu1 %vm420_vm0, %v550_v51  ;;  %v554_v63 = vadd.f32 %v532_v52, %v329_v44  ;;  %v553_v1 = vadd.f32 %v527_v55, %v329_v44  ;;  %v547_v3 = vadd.f32 %v1625_v57, %v411_v60 }
  0xe5   : > { %1635 = vmatmul.mubr.msk.f32.vlgmr.msra.gmra.mxu1 %vm420_vm0, %v551_v54  ;;  %v541_v61 = vpop.f32.mrf.mxu1 }
  0xe6   : > { %v552_v62 = vadd.f32 %v522_v58, %v329_v44  ;;  %v542_v0 = vadd.f32 %v541_v61, %v407_v53  ;;  %v557_v13 = vadd.f32 %v547_v3, %v329_v44 }
  0xe8   : > { %1637 = vmatprep.mubr.msk.f32.mxu1 %vm420_vm0, %v552_v62  ;;  %v556_v9 = vadd.f32 %v542_v0, %v329_v44 }
  0xe9   : > { %1638 = vmatmul.mubr.msk.f32.gmra.mxu1 %vm420_vm0, %v553_v1 }
  0xea   : > { %1640 = vmatprep.mubr.msk.f32.mxu1 %vm420_vm0, %v554_v63 }
  0xed   : > { %1641 = vmatmul.mubr.msk.f32.gmra.mxu1 %vm420_vm0, %v555_v2 }
  0xee   : > { %1643 = vmatprep.mubr.msk.f32.mxu1 %vm420_vm0, %v556_v9 }
  0xf1   : > { %1644 = vmatmul.mubr.msk.f32.gmra.mxu1 %vm420_vm0, %v557_v13 }
 0x1a5   : > { %v1636_v21 = vpop.f32.mrf.mxu1 }
 0x1a6   : > { %v658_v22 = vadd.f32 %v1636_v21, %v561_v19 }
 0x1a7   : > { %v652_v23 = vpop.f32.mrf.mxu1 }
 0x1a8   : > { %v653_v24 = vadd.f32 %v652_v23, %v561_v19  ;;  %v692_v25 = vmax.f32 %v658_v22, 0.0 }
 0x1a9   : > { %v1639_v26 = vpop.f32.mrf.mxu1 }
 0x1aa   : > { %v691_v27 = vmax.f32 %v653_v24, 0.0  ;;  %v668_v29 = vadd.f32 %v1639_v26, %v561_v19  ;;  %v700_v35 = vadd.f32 %v692_v25, %v1994_v5 }
 0x1ab   : > { %v662_v30 = vpop.f32.mrf.mxu1 }
 0x1ac   : > { %v663_v31 = vadd.f32 %v662_v30, %v561_v19  ;;  %v699_v32 = vadd.f32 %v691_v27, %v1992_v4  ;;  %v694_v33 = vmax.f32 %v668_v29, 0.0  ;;  %v710_v42 = vsel %vm420_vm0, %v700_v35, 0.0 }
 0x1ad   : > { %v1642_v34 = vpop.f32.mrf.mxu1 }
 0x1ae   : > { %v693_v36 = vmax.f32 %v663_v31, 0.0  ;;  %v678_v37 = vadd.f32 %v1642_v34, %v561_v19  ;;  %v707_v28 = vsel %vm420_vm0, %v699_v32, 0.0  ;;  %v702_v43 = vadd.f32 %v694_v33, %v2013_v11 }
 0x1af   : > { %v672_v38 = vpop.f32.mrf.mxu1  ;;  %708 = vadd.xlane.f32.xlu0 %v707_v28 }
 0x1b0   : > { %v673_v39 = vadd.f32 %v672_v38, %v561_v19  ;;  %v701_v40 = vadd.f32 %v693_v36, %v1998_v6  ;;  %v696_v44 = vmax.f32 %v678_v37, 0.0  ;;  %v716_v49 = vsel %vm420_vm0, %v702_v43, 0.0 }
 0x1b1   : > { %v1645_v41 = vpop.f32.mrf.mxu1 }
 0x1b2   : > { %v695_v4 = vmax.f32 %v673_v39, 0.0  ;;  %v688_v45 = vadd.f32 %v1645_v41, %v561_v19  ;;  %v713_v46 = vsel %vm420_vm0, %v701_v40, 0.0  ;;  %v704_v52 = vadd.f32 %v696_v44, %v2002_v8  ;;  %v322_v39 = vld [vmem:[%s2368_s3 + $0x78] sm:$0xff]  ;;  %v320_v44 = vld [vmem:[%s2368_s3 + $0x68] sm:$0xff] }
 0x1b3   : > { %v682_v5 = vpop.f32.mrf.mxu1  ;;  %714 = vadd.xlane.f32.xlu1 %v713_v46  ;;  %711 = vadd.xlane.f32.xlu0 %v710_v42  ;;  %v838_v41 = vsub.s32 3, %v2039_v20  ;;  %v1656_v42 = vpop.f32.mrf.mxu0 }
 0x1b4   : > { %v683_v47 = vadd.f32 %v682_v5, %v561_v19  ;;  %v703_v48 = vadd.f32 %v695_v4, %v2000_v7  ;;  %v698_v50 = vmax.f32 %v688_v45, 0.0  ;;  %v722_v53 = vsel %vm420_vm0, %v704_v52, 0.0  ;;  %1686 = vmatprep.subr.mxu0 %v322_v39  ;;  %v326_v4 = vld [vmem:[%s2368_s3 + $0x98] sm:$0xff]  ;;  %v319_v5 = vld [vmem:[%s2368_s3 + $0x60] sm:$0xff] }
 0x1b5   : > { %1687 = vmatpush3.msra.mxu0 %v322_v39  ;;  %v906_v45 = vpop.f32.mrf.mxu0  ;;  %1666 = vmatprep.subr.mxu1 %v326_v4 }
 0x1b6   : > { %v697_v6 = vmax.f32 %v683_v47, 0.0  ;;  %v719_v51 = vsel %vm420_vm0, %v703_v48, 0.0  ;;  %v706_v55 = vadd.f32 %v698_v50, %v2021_v12  ;;  %1667 = vmatpush3.msra.mxu1 %v326_v4  ;;  %v325_v47 = vld [vmem:[%s2368_s3 + $0x90] sm:$0xff]  ;;  %v324_v50 = vld [vmem:[%s2368_s3 + $0x88] sm:$0xff] }
 0x1b7   : > { %717 = vadd.xlane.f32.xlu1 %v716_v49  ;;  %720 = vadd.xlane.f32.xlu0 %v719_v51  ;;  %v1659_v49 = vpop.f32.mrf.mxu0  ;;  %v323_v51 = vld [vmem:[%s2368_s3 + $0x80] sm:$0xff] }
 0x1b8   : > { %v705_v11 = vadd.f32 %v697_v6, %v2009_v10  ;;  %v728_v7 = vsel %vm420_vm0, %v706_v55, 0.0  ;;  %1668 = vmatprep.subr.mxu1 %v325_v47 }
 0x1b9   : > { %1669 = vmatpush3.msra.mxu1 %v325_v47  ;;  %v916_v6 = vpop.f32.mrf.mxu0 }
 0x1ba   : > { %v725_v54 = vsel %vm420_vm0, %v705_v11, 0.0  ;;  %1670 = vmatprep.subr.mxu1 %v324_v50 }
 0x1bb   : > { %723 = vadd.xlane.f32.xlu1 %v722_v53  ;;  %726 = vadd.xlane.f32.xlu0 %v725_v54  ;;  %v1662_v53 = vpop.f32.mrf.mxu0 }
 0x1bc   : > { %1671 = vmatpush3.msra.mxu1 %v324_v50 }
 0x1bd   : > { %1672 = vmatprep.subr.mxu1 %v323_v51  ;;  %v926_v54 = vpop.f32.mrf.mxu0 }
 0x1be   : > { %1673 = vmatpush3.msra.mxu1 %v323_v51 }
 0x1bf   : > { %729 = vadd.xlane.f32.xlu1 %v728_v7 }
 0x238   : > { %v709_v56 = vpop.xlane.xlu0 %708 }
 0x239   : > { %v732_v57 = vmul.f32 0.03125, %v709_v56  ;;  %v1665_v56 = vpop.f32.mrf.mxu0 }
 0x23b   : > { %v2116_v58 = vsub.f32 %v699_v32, %v732_v57  ;;  %v936_v57 = vpop.f32.mrf.mxu0 }
 0x23c   : > { %v715_v8 = vpop.xlane.xlu1 %714  ;;  %v712_v59 = vpop.xlane.xlu0 %711 }
 0x23d   : > { %v734_v60 = vmul.f32 0.03125, %v715_v8  ;;  %v733_v61 = vmul.f32 0.03125, %v712_v59  ;;  %v748_v10 = vmul.f32 %v2116_v58, %v2116_v58 }
 0x23f   : > { %v2120_v62 = vsub.f32 %v701_v40, %v734_v60  ;;  %v2122_v63 = vsub.f32 %v700_v35, %v733_v61  ;;  %v756_v12 = vsel %vm420_vm0, %v748_v10, 0.0  ;;  %v321_v40 = vld [vmem:[%s2368_s3 + $0x70] sm:$0xff] }
 0x240   : > { %v718_v0 = vpop.xlane.xlu1 %717  ;;  %757 = vadd.xlane.f32.xlu0 %v756_v12  ;;  %v721_v1 = vpop.xlane.xlu0 %720  ;;  %1688 = vmatprep.subr.mxu0 %v321_v40 }
 0x241   : > { %v735_v2 = vmul.f32 0.03125, %v718_v0  ;;  %v736_v3 = vmul.f32 0.03125, %v721_v1  ;;  %v750_v9 = vmul.f32 %v2120_v62, %v2120_v62  ;;  %v749_v13 = vmul.f32 %v2122_v63, %v2122_v63  ;;  %1689 = vmatpush3.msra.mxu0 %v321_v40 }
 0x242   : > { %1690 = vmatprep.subr.mxu0 %v320_v44 }
 0x243   : > { %v2129_v14 = vsub.f32 %v702_v43, %v735_v2  ;;  %v2131_v15 = vsub.f32 %v703_v48, %v736_v3  ;;  %v762_v16 = vsel %vm420_vm0, %v750_v9, 0.0  ;;  %v759_v17 = vsel %vm420_vm0, %v749_v13, 0.0  ;;  %1691 = vmatpush3.msra.mxu0 %v320_v44 }
 0x244   : > { %v724_v19 = vpop.xlane.xlu1 %723  ;;  %763 = vadd.xlane.f32.xlu0 %v762_v16  ;;  %760 = vadd.xlane.f32.xlu1 %v759_v17  ;;  %v727_v21 = vpop.xlane.xlu0 %726  ;;  %v839_v43 = vrot.slane %v2096_v18, %v838_v41 }
 0x245   : > { %v737_v22 = vmul.f32 0.03125, %v724_v19  ;;  %v738_v23 = vmul.f32 0.03125, %v727_v21  ;;  %v751_v24 = vmul.f32 %v2129_v14, %v2129_v14  ;;  %v752_v25 = vmul.f32 %v2131_v15, %v2131_v15  ;;  %1692 = vmatprep.subr.mxu0 %v319_v5 }
 0x246   : > { %v907_v46 = vadd.f32 %v906_v45, %v839_v43  ;;  %v912_v48 = vadd.f32 %v1656_v42, %v839_v43  ;;  %1693 = vmatpush3.msra.mxu0 %v319_v5  ;;  %v927_v7 = vadd.f32 %v926_v54, %v839_v43  ;;  %v942_v8 = vadd.f32 %v1665_v56, %v839_v43 }
 0x247   : > { %v2139_v26 = vsub.f32 %v704_v52, %v737_v22  ;;  %v2141_v27 = vsub.f32 %v705_v11, %v738_v23  ;;  %v765_v29 = vsel %vm420_vm0, %v751_v24, 0.0  ;;  %v768_v30 = vsel %vm420_vm0, %v752_v25, 0.0 }
 0x248   : > { %v730_v31 = vpop.xlane.xlu1 %729  ;;  %766 = vadd.xlane.f32.xlu1 %v765_v29  ;;  %769 = vadd.xlane.f32.xlu0 %v768_v30  ;;  %v922_v52 = vadd.f32 %v1659_v49, %v839_v43  ;;  %v917_v11 = vadd.f32 %v916_v6, %v839_v43  ;;  %v937_v59 = vadd.f32 %v936_v57, %v839_v43  ;;  %v814_v25 = vsub.s32 1, %v2039_v20 }
 0x249   : > { %v739_v32 = vmul.f32 0.03125, %v730_v31  ;;  %v753_v33 = vmul.f32 %v2139_v26, %v2139_v26  ;;  %v754_v34 = vmul.f32 %v2141_v27, %v2141_v27  ;;  %1694 = vmatprep.mubr.msk.f32.mxu0 %vm420_vm0, %v907_v46 }
 0x24a   : > { %1695 = vmatmul.mubr.msk.f32.vlgmr.msra.gmra.mxu0 %vm420_vm0, %v912_v48 }
 0x24b   : > { %v2149_v35 = vsub.f32 %v706_v55, %v739_v32  ;;  %v771_v36 = vsel %vm420_vm0, %v753_v33, 0.0  ;;  %v774_v37 = vsel %vm420_vm0, %v754_v34, 0.0  ;;  %1697 = vmatprep.mubr.msk.f32.mxu0 %vm420_vm0, %v917_v11  ;;  %v932_v55 = vadd.f32 %v1662_v53, %v839_v43 }
 0x24c   : > { %772 = vadd.xlane.f32.xlu1 %v771_v36  ;;  %775 = vadd.xlane.f32.xlu0 %v774_v37  ;;  %v826_v33 = vsub.s32 2, %v2039_v20  ;;  %v815_v36 = vrot.slane %v2096_v18, %v814_v25 }
 0x24d   : > { %v755_v28 = vmul.f32 %v2149_v35, %v2149_v35 }
 0x24e   : > { %1698 = vmatmul.mubr.msk.f32.gmra.mxu0 %vm420_vm0, %v922_v52  ;;  %v827_v40 = vrot.slane %v2096_v18, %v826_v33 }
 0x24f   : > { %v777_v38 = vsel %vm420_vm0, %v755_v28, 0.0  ;;  %1700 = vmatprep.mubr.msk.f32.mxu0 %vm420_vm0, %v927_v7 }
 0x250   : > { %778 = vadd.xlane.f32.xlu1 %v777_v38 }
 0x252   : > { %1701 = vmatmul.mubr.msk.f32.gmra.mxu0 %vm420_vm0, %v932_v55 }
 0x253   : > { %1703 = vmatprep.mubr.msk.f32.mxu0 %vm420_vm0, %v937_v59 }
 0x256   : > { %1704 = vmatmul.mubr.msk.f32.gmra.mxu0 %vm420_vm0, %v942_v8 }
 0x2c9   : > { %v758_v60 = vpop.xlane.xlu0 %757 }
 0x2ca   : > { %v780_v61 = vmul.f32 0.03125, %v758_v60 }
 0x2cc   : > { %v788_v10 = vadd.f32 1e-05, %v780_v61 }
 0x2cd   : > { %v761_v12 = vpop.xlane.xlu1 %760  ;;  %v764_v0 = vpop.xlane.xlu0 %763 }
 0x2ce   : > { %1773 = vrsqrt.f32 %v788_v10  ;;  %v781_v1 = vmul.f32 0.03125, %v761_v12  ;;  %v782_v2 = vmul.f32 0.03125, %v764_v0  ;;  %v1205_v10 = vsub.s32 4, %v2039_v20 }
 0x2d0   : > { %v789_v3 = vadd.f32 1e-05, %v781_v1  ;;  %v790_v9 = vadd.f32 1e-05, %v782_v2  ;;  %v1206_v0 = vrot.slane %v2096_v18, %v1205_v10 }
 0x2d1   : > { %v767_v13 = vpop.xlane.xlu1 %766  ;;  %v770_v16 = vpop.xlane.xlu0 %769 }
 0x2d2   : > { %1775 = vrsqrt.f32 %v789_v3  ;;  %v783_v17 = vmul.f32 0.03125, %v767_v13  ;;  %v784_v19 = vmul.f32 0.03125, %v770_v16 }
 0x2d3   : > { %1777 = vrsqrt.f32 %v790_v9 }
 0x2d4   : > { %v791_v21 = vadd.f32 1e-05, %v783_v17  ;;  %v792_v22 = vadd.f32 1e-05, %v784_v19 }
 0x2d5   : > { %v773_v23 = vpop.xlane.xlu1 %772  ;;  %v776_v24 = vpop.xlane.xlu0 %775 }
 0x2d6   : > { %1779 = vrsqrt.f32 %v791_v21  ;;  %v785_v29 = vmul.f32 0.03125, %v773_v23  ;;  %v786_v30 = vmul.f32 0.03125, %v776_v24 }
 0x2d7   : > { %1781 = vrsqrt.f32 %v792_v22 }
 0x2d8   : > { %v793_v31 = vadd.f32 1e-05, %v785_v29  ;;  %v794_v32 = vadd.f32 1e-05, %v786_v30 }
 0x2d9   : > { %v779_v34 = vpop.xlane.xlu1 %778 }
 0x2da   : > { %1783 = vrsqrt.f32 %v793_v31  ;;  %v787_v37 = vmul.f32 0.03125, %v779_v34 }
 0x2db   : > { %v1774_v28 = vpop.eup %1773  ;;  %1785 = vrsqrt.f32 %v794_v32 }
 0x2dc   : > { %v795_v38 = vadd.f32 1e-05, %v787_v37  ;;  %v804_v39 = vmul.f32 %v1774_v28, %v2116_v58 }
 0x2de   : > { %1787 = vrsqrt.f32 %v795_v38  ;;  %v816_v41 = vmul.f32 %v815_v36, %v804_v39 }
 0x2df   : > { %v1776_v42 = vpop.eup %1775 }
 0x2e0   : > { %v1778_v43 = vpop.eup %1777  ;;  %v805_v44 = vmul.f32 %v1776_v42, %v2122_v63  ;;  %v2196_v4 = vadd.f32 %v827_v40, %v816_v41 }
 0x2e1   : > { %v806_v45 = vmul.f32 %v1778_v43, %v2120_v62 }
 0x2e2   : > { %v817_v46 = vmul.f32 %v815_v36, %v805_v44  ;;  %1674 = vmatprep.mubr.msk.f32.mxu1 %vm420_vm0, %v2196_v4 }
 0x2e3   : > { %v1780_v5 = vpop.eup %1779  ;;  %v818_v47 = vmul.f32 %v815_v36, %v806_v45 }
 0x2e4   : > { %v1782_v48 = vpop.eup %1781  ;;  %v829_v58 = vadd.f32 %v827_v40, %v817_v46  ;;  %v807_v49 = vmul.f32 %v1780_v5, %v2129_v14 }
 0x2e5   : > { %v2202_v50 = vadd.f32 %v827_v40, %v818_v47  ;;  %v808_v6 = vmul.f32 %v1782_v48, %v2131_v15 }
 0x2e6   : > { %1675 = vmatmul.mubr.msk.f32.vlgmr.msra.gmra.mxu1 %vm420_vm0, %v829_v58  ;;  %v819_v63 = vmul.f32 %v815_v36, %v807_v49 }
 0x2e7   : > { %v1784_v51 = vpop.eup %1783  ;;  %1677 = vmatprep.mubr.msk.f32.mxu1 %vm420_vm0, %v2202_v50  ;;  %v820_v62 = vmul.f32 %v815_v36, %v808_v6 }
 0x2e8   : > { %v1786_v52 = vpop.eup %1785  ;;  %v831_v11 = vadd.f32 %v827_v40, %v819_v63  ;;  %v809_v53 = vmul.f32 %v1784_v51, %v2139_v26 }
 0x2e9   : > { %v2209_v54 = vadd.f32 %v827_v40, %v820_v62  ;;  %v810_v14 = vmul.f32 %v1786_v52, %v2141_v27 }
 0x2ea   : > { %1678 = vmatmul.mubr.msk.f32.gmra.mxu1 %vm420_vm0, %v831_v11  ;;  %v821_v55 = vmul.f32 %v815_v36, %v809_v53 }
 0x2eb   : > { %v1788_v15 = vpop.eup %1787  ;;  %1680 = vmatprep.mubr.msk.f32.mxu1 %vm420_vm0, %v2209_v54  ;;  %v822_v7 = vmul.f32 %v815_v36, %v810_v14 }
 0x2ec   : > { %v833_v56 = vadd.f32 %v827_v40, %v821_v55  ;;  %v811_v57 = vmul.f32 %v1788_v15, %v2149_v35 }
 0x2ed   : > { %v2216_v8 = vadd.f32 %v827_v40, %v822_v7 }
 0x2ee   : > { %1681 = vmatmul.mubr.msk.f32.gmra.mxu1 %vm420_vm0, %v833_v56  ;;  %v823_v26 = vmul.f32 %v815_v36, %v811_v57 }
 0x2ef   : > { %1683 = vmatprep.mubr.msk.f32.mxu1 %vm420_vm0, %v2216_v8 }
 0x2f0   : > { %v835_v27 = vadd.f32 %v827_v40, %v823_v26 }
 0x2f2   : > { %1684 = vmatmul.mubr.msk.f32.gmra.mxu1 %vm420_vm0, %v835_v27 }
 0x30a   : > { %v1696_v59 = vpop.f32.mrf.mxu0 }
 0x30c   : > { %v1164_v60 = vpop.f32.mrf.mxu0 }
 0x30e   : > { %v1699_v61 = vpop.f32.mrf.mxu0 }
 0x310   : > { %v1174_v12 = vpop.f32.mrf.mxu0 }
 0x312   : > { %v1702_v3 = vpop.f32.mrf.mxu0 }
 0x314   : > { %v1184_v22 = vpop.f32.mrf.mxu0 }
 0x316   : > { %v1705_v37 = vpop.f32.mrf.mxu0 }
 0x318   : > { %v1194_v48 = vpop.f32.mrf.mxu0 }
 0x3a6   : > { %v1676_v35 = vpop.f32.mrf.mxu1 }
 0x3a7   : > { %v1170_v1 = vadd.f32 %v1696_v59, %v1676_v35 }
 0x3a8   : > { %v1035_v2 = vpop.f32.mrf.mxu1 }
 0x3a9   : > { %v1208_v9 = vadd.f32 %v1206_v0, %v1170_v1  ;;  %v1165_v13 = vadd.f32 %v1164_v60, %v1035_v2 }
 0x3aa   : > { %v1679_v16 = vpop.f32.mrf.mxu1 }
 0x3ab   : > { %v1216_v17 = vmax.f32 %v1208_v9, 0.0  ;;  %v1207_v19 = vadd.f32 %v1206_v0, %v1165_v13  ;;  %v1180_v21 = vadd.f32 %v1699_v61, %v1679_v16 }
 0x3ac   : > { %v1045_v23 = vpop.f32.mrf.mxu1 }
 0x3ad   : > { %v1215_v24 = vmax.f32 %v1207_v19, 0.0  ;;  %v1210_v25 = vadd.f32 %v1206_v0, %v1180_v21  ;;  %v1175_v29 = vadd.f32 %v1174_v12, %v1045_v23  ;;  %v1224_v30 = vadd.f32 %v1216_v17, %v829_v58 }
 0x3ae   : > { %v1682_v31 = vpop.f32.mrf.mxu1 }
 0x3af   : > { %v1218_v32 = vmax.f32 %v1210_v25, 0.0  ;;  %v1209_v33 = vadd.f32 %v1206_v0, %v1175_v29  ;;  %v1190_v34 = vadd.f32 %v1702_v3, %v1682_v31  ;;  %v1234_v36 = vsel %vm420_vm0, %v1224_v30, 0.0 }
 0x3b0   : > { %1235 = vadd.xlane.f32.xlu1 %v1234_v36  ;;  %v1055_v28 = vpop.f32.mrf.mxu1  ;;  %v1223_v38 = vadd.f32 %v1215_v24, %v2196_v4 }
 0x3b1   : > { %v1217_v39 = vmax.f32 %v1209_v33, 0.0  ;;  %v1212_v40 = vadd.f32 %v1206_v0, %v1190_v34  ;;  %v1185_v41 = vadd.f32 %v1184_v22, %v1055_v28  ;;  %v1226_v42 = vadd.f32 %v1218_v32, %v831_v11 }
 0x3b2   : > { %v1231_v43 = vsel %vm420_vm0, %v1223_v38, 0.0  ;;  %v1685_v44 = vpop.f32.mrf.mxu1 }
 0x3b3   : > { %v1220_v45 = vmax.f32 %v1212_v40, 0.0  ;;  %v1211_v46 = vadd.f32 %v1206_v0, %v1185_v41  ;;  %1232 = vadd.xlane.f32.xlu0 %v1231_v43  ;;  %v1200_v5 = vadd.f32 %v1705_v37, %v1685_v44  ;;  %v1240_v47 = vsel %vm420_vm0, %v1226_v42, 0.0 }
 0x3b4   : > { %1241 = vadd.xlane.f32.xlu1 %v1240_v47  ;;  %v1065_v58 = vpop.f32.mrf.mxu1  ;;  %v1225_v49 = vadd.f32 %v1217_v39, %v2202_v50 }
 0x3b5   : > { %v1219_v6 = vmax.f32 %v1211_v46, 0.0  ;;  %v1214_v4 = vadd.f32 %v1206_v0, %v1200_v5  ;;  %v1195_v63 = vadd.f32 %v1194_v48, %v1065_v58  ;;  %v1228_v51 = vadd.f32 %v1220_v45, %v833_v56 }
 0x3b6   : > { %v1237_v62 = vsel %vm420_vm0, %v1225_v49, 0.0 }
 0x3b7   : > { %v1222_v52 = vmax.f32 %v1214_v4, 0.0  ;;  %v1213_v11 = vadd.f32 %v1206_v0, %v1195_v63  ;;  %1238 = vadd.xlane.f32.xlu0 %v1237_v62  ;;  %v1246_v53 = vsel %vm420_vm0, %v1228_v51, 0.0  ;;  %v1227_v14 = vadd.f32 %v1219_v6, %v2209_v54 }
 0x3b8   : > { %1247 = vadd.xlane.f32.xlu1 %v1246_v53 }
 0x3b9   : > { %v1221_v55 = vmax.f32 %v1213_v11, 0.0  ;;  %v1243_v15 = vsel %vm420_vm0, %v1227_v14, 0.0  ;;  %v1230_v7 = vadd.f32 %v1222_v52, %v835_v27 }
 0x3bb   : > { %1244 = vadd.xlane.f32.xlu0 %v1243_v15  ;;  %v1252_v50 = vsel %vm420_vm0, %v1230_v7, 0.0  ;;  %v1229_v57 = vadd.f32 %v1221_v55, %v2216_v8 }
 0x3bc   : > { %1253 = vadd.xlane.f32.xlu1 %v1252_v50 }
 0x3bd   : > { %v1249_v56 = vsel %vm420_vm0, %v1229_v57, 0.0 }
 0x3bf   : > { %1250 = vadd.xlane.f32.xlu0 %v1249_v56  ;;  %v1349_v56 = vsub.s32 6, %v2039_v20 }
 0x439   : > { %v1236_v26 = vpop.xlane.xlu1 %1235 }
 0x43a   : > { %v1256_v59 = vmul.f32 0.03125, %v1236_v26 }
 0x43c   : > { %v2236_v60 = vsub.f32 %v1224_v30, %v1256_v59  ;;  %v1233_v61 = vpop.xlane.xlu0 %1232 }
 0x43d   : > { %v1255_v54 = vmul.f32 0.03125, %v1233_v61  ;;  %v1242_v10 = vpop.xlane.xlu1 %1241 }
 0x43e   : > { %v1258_v12 = vmul.f32 0.03125, %v1242_v10  ;;  %v1272_v27 = vmul.f32 %v2236_v60, %v2236_v60 }
 0x43f   : > { %v2240_v0 = vsub.f32 %v1223_v38, %v1255_v54 }
 0x440   : > { %v2242_v35 = vsub.f32 %v1226_v42, %v1258_v12  ;;  %v1239_v8 = vpop.xlane.xlu0 %1238  ;;  %v1282_v1 = vsel %vm420_vm0, %v1272_v27, 0.0  ;;  %v1350_v27 = vrot.slane %v2096_v18, %v1349_v56 }
 0x441   : > { %v1257_v2 = vmul.f32 0.03125, %v1239_v8  ;;  %v1248_v3 = vpop.xlane.xlu1 %1247  ;;  %1283 = vadd.xlane.f32.xlu1 %v1282_v1  ;;  %v1271_v9 = vmul.f32 %v2240_v0, %v2240_v0 }
 0x442   : > { %v1260_v13 = vmul.f32 0.03125, %v1248_v3  ;;  %v1274_v16 = vmul.f32 %v2242_v35, %v2242_v35 }
 0x443   : > { %v2249_v17 = vsub.f32 %v1225_v49, %v1257_v2  ;;  %v1279_v19 = vsel %vm420_vm0, %v1271_v9, 0.0 }
 0x444   : > { %v2252_v21 = vsub.f32 %v1228_v51, %v1260_v13  ;;  %1280 = vadd.xlane.f32.xlu0 %v1279_v19  ;;  %v1245_v22 = vpop.xlane.xlu0 %1244  ;;  %v1288_v23 = vsel %vm420_vm0, %v1274_v16, 0.0 }
 0x445   : > { %v1259_v24 = vmul.f32 0.03125, %v1245_v22  ;;  %1289 = vadd.xlane.f32.xlu1 %v1288_v23  ;;  %v1254_v25 = vpop.xlane.xlu1 %1253  ;;  %v1273_v29 = vmul.f32 %v2249_v17, %v2249_v17 }
 0x446   : > { %v1262_v30 = vmul.f32 0.03125, %v1254_v25  ;;  %v1276_v31 = vmul.f32 %v2252_v21, %v2252_v21 }
 0x447   : > { %v2259_v32 = vsub.f32 %v1227_v14, %v1259_v24  ;;  %v1285_v33 = vsel %vm420_vm0, %v1273_v29, 0.0 }
 0x448   : > { %v2262_v34 = vsub.f32 %v1230_v7, %v1262_v30  ;;  %1286 = vadd.xlane.f32.xlu0 %v1285_v33  ;;  %v1251_v36 = vpop.xlane.xlu0 %1250  ;;  %v1294_v37 = vsel %vm420_vm0, %v1276_v31, 0.0  ;;  %v1337_v7 = vsub.s32 5, %v2039_v20 }
 0x449   : > { %v1261_v28 = vmul.f32 0.03125, %v1251_v36  ;;  %1295 = vadd.xlane.f32.xlu1 %v1294_v37  ;;  %v1275_v38 = vmul.f32 %v2259_v32, %v2259_v32 }
 0x44a   : > { %v1278_v39 = vmul.f32 %v2262_v34, %v2262_v34  ;;  %v1338_v54 = vrot.slane %v2096_v18, %v1337_v7 }
 0x44b   : > { %v2269_v40 = vsub.f32 %v1229_v57, %v1261_v28  ;;  %v1291_v41 = vsel %vm420_vm0, %v1275_v38, 0.0 }
 0x44c   : > { %1292 = vadd.xlane.f32.xlu0 %v1291_v41  ;;  %v1300_v42 = vsel %vm420_vm0, %v1278_v39, 0.0 }
 0x44d   : > { %1301 = vadd.xlane.f32.xlu1 %v1300_v42  ;;  %v1277_v43 = vmul.f32 %v2269_v40, %v2269_v40 }
 0x44f   : > { %v1297_v44 = vsel %vm420_vm0, %v1277_v43, 0.0 }
 0x450   : > { %1298 = vadd.xlane.f32.xlu0 %v1297_v44 }
 0x4ca   : > { %v1284_v45 = vpop.xlane.xlu1 %1283 }
 0x4cb   : > { %v1304_v46 = vmul.f32 0.03125, %v1284_v45 }
 0x4cd   : > { %v1312_v5 = vadd.f32 1e-05, %v1304_v46  ;;  %v1281_v47 = vpop.xlane.xlu0 %1280 }
 0x4ce   : > { %v1303_v48 = vmul.f32 0.03125, %v1281_v47  ;;  %v1290_v58 = vpop.xlane.xlu1 %1289 }
 0x4cf   : > { %1789 = vrsqrt.f32 %v1312_v5  ;;  %v1306_v49 = vmul.f32 0.03125, %v1290_v58 }
 0x4d0   : > { %v1311_v6 = vadd.f32 1e-05, %v1303_v48 }
 0x4d1   : > { %v1314_v4 = vadd.f32 1e-05, %v1306_v49  ;;  %v1287_v63 = vpop.xlane.xlu0 %1286 }
 0x4d2   : > { %1791 = vrsqrt.f32 %v1311_v6  ;;  %v1305_v51 = vmul.f32 0.03125, %v1287_v63  ;;  %v1296_v62 = vpop.xlane.xlu1 %1295 }
 0x4d3   : > { %1793 = vrsqrt.f32 %v1314_v4  ;;  %v1308_v52 = vmul.f32 0.03125, %v1296_v62 }
 0x4d4   : > { %v1313_v11 = vadd.f32 1e-05, %v1305_v51 }
 0x4d5   : > { %v1316_v53 = vadd.f32 1e-05, %v1308_v52  ;;  %v1293_v14 = vpop.xlane.xlu0 %1292 }
 0x4d6   : > { %1795 = vrsqrt.f32 %v1313_v11  ;;  %v1307_v55 = vmul.f32 0.03125, %v1293_v14  ;;  %v1302_v15 = vpop.xlane.xlu1 %1301 }
 0x4d7   : > { %1797 = vrsqrt.f32 %v1316_v53  ;;  %v1310_v50 = vmul.f32 0.03125, %v1302_v15 }
 0x4d8   : > { %v1315_v57 = vadd.f32 1e-05, %v1307_v55 }
 0x4d9   : > { %v1318_v26 = vadd.f32 1e-05, %v1310_v50  ;;  %v1299_v59 = vpop.xlane.xlu0 %1298 }
 0x4da   : > { %1799 = vrsqrt.f32 %v1315_v57  ;;  %v1309_v61 = vmul.f32 0.03125, %v1299_v59 }
 0x4db   : > { %1801 = vrsqrt.f32 %v1318_v26 }
 0x4dc   : > { %v1790_v10 = vpop.eup %1789  ;;  %v1317_v12 = vadd.f32 1e-05, %v1309_v61 }
 0x4dd   : > { %v1328_v8 = vmul.f32 %v1790_v10, %v2236_v60 }
 0x4de   : > { %1803 = vrsqrt.f32 %v1317_v12 }
 0x4df   : > { %v1792_v1 = vpop.eup %1791  ;;  %v1340_v2 = vmul.f32 %v1338_v54, %v1328_v8 }
 0x4e0   : > { %v1794_v20 = vpop.eup %1793  ;;  %v1327_v3 = vmul.f32 %v1792_v1, %v2240_v0 }
 0x4e1   : > { %v1352_v9 = vadd.f32 %v1350_v27, %v1340_v2  ;;  %v1330_v13 = vmul.f32 %v1794_v20, %v2242_v35 }
 0x4e2   : > { %v1339_v16 = vmul.f32 %v1338_v54, %v1327_v3 }
 0x4e3   : > { %v1796_v19 = vpop.eup %1795  ;;  %1360 = vst.msk [vmem:[%s2286_s24 + $0x8] sm:$0xff] %vm420_vm0, %v1352_v9  ;;  %v1342_v18 = vmul.f32 %v1338_v54, %v1330_v13 }
 0x4e4   : > { %v1798_v60 = vpop.eup %1797  ;;  %v1351_v22 = vadd.f32 %v1350_v27, %v1339_v16  ;;  %v1329_v23 = vmul.f32 %v1796_v19, %v2249_v17 }
 0x4e5   : > { %v1354_v0 = vadd.f32 %v1350_v27, %v1342_v18  ;;  %v1332_v24 = vmul.f32 %v1798_v60, %v2252_v21 }
 0x4e6   : > { %1359 = vst.msk [vmem:[%s2286_s24] sm:$0xff] %vm420_vm0, %v1351_v22  ;;  %v1341_v35 = vmul.f32 %v1338_v54, %v1329_v23 }
 0x4e7   : > { %v1800_v25 = vpop.eup %1799  ;;  %1362 = vst.msk [vmem:[%s2286_s24 + $0x18] sm:$0xff] %vm420_vm0, %v1354_v0  ;;  %v1344_v29 = vmul.f32 %v1338_v54, %v1332_v24 }
 0x4e8   : > { %v1802_v30 = vpop.eup %1801  ;;  %v1353_v31 = vadd.f32 %v1350_v27, %v1341_v35  ;;  %v1331_v33 = vmul.f32 %v1800_v25, %v2259_v32 }
 0x4e9   : > { %v1356_v17 = vadd.f32 %v1350_v27, %v1344_v29  ;;  %v1334_v36 = vmul.f32 %v1802_v30, %v2262_v34 }
 0x4ea   : > { %1361 = vst.msk [vmem:[%s2286_s24 + $0x10] sm:$0xff] %vm420_vm0, %v1353_v31  ;;  %v1343_v21 = vmul.f32 %v1338_v54, %v1331_v33 }
 0x4eb   : > { %v1804_v37 = vpop.eup %1803  ;;  %1364 = vst.msk [vmem:[%s2286_s24 + $0x28] sm:$0xff] %vm420_vm0, %v1356_v17  ;;  %v1346_v28 = vmul.f32 %v1338_v54, %v1334_v36 }
 0x4ec   : > { %v1355_v38 = vadd.f32 %v1350_v27, %v1343_v21  ;;  %v1333_v39 = vmul.f32 %v1804_v37, %v2269_v40 }
 0x4ed   : > { %v1358_v41 = vadd.f32 %v1350_v27, %v1346_v28 }
 0x4ee   : > { %1363 = vst.msk [vmem:[%s2286_s24 + $0x20] sm:$0xff] %vm420_vm0, %v1355_v38  ;;  %v1345_v32 = vmul.f32 %v1338_v54, %v1333_v39 }
 0x4ef   : > { %1366 = vst.msk [vmem:[%s2286_s24 + $0x38] sm:$0xff] %vm420_vm0, %v1358_v41 }
 0x4f0   : > { %v1357_v34 = vadd.f32 %v1350_v27, %v1345_v32 }
 0x4f2   : > { %1365 = vst.msk [vmem:[%s2286_s24 + $0x30] sm:$0xff] %vm420_vm0, %v1357_v34 }
 0x4f3   : > { %1818 = shalt.err (!%p1815_p5)
}
 0x4f4   : > { %s1819_s14 = scalar_lea.hbm %s2312_s8, 1024  ;;  %s1823_s17 = scalar_lea.hbm %s2370_s5, 2048 }
 0x4f5   : > { %p1820_p6 = scmp.ne.s32.totalorder %s2312_s8, %s1819_s14  ;;  %p1824_p10 = scmp.lt.s32.totalorder %s2312_s8, %s2370_s5 }
 0x4f6   : > { %p1825_p11 = scmp.lt.s32.totalorder %s1823_s17, %s1819_s14 }
 0x4f7   : > { %p1821_p7 = pnand %p1820_p6, %p1957_p4 }
 0x4f8   : > { %p1826_p12 = por %p1825_p11, %p1824_p10 }
 0x4f9   : > { %p1822_p9 = pneg %p1821_p7 }
 0x4fb   : > { %p1827_p13 = pnand %p1826_p12, %p1822_p9 }
 0x4fd   : > { %1830 = shalt.err (!%p1827_p13)
}
 0x4fe   : > { %s1885_s25 = smov 128   ;;  %s1886_s29 = smov 8  }
 0x4ff   : > { %1714 = dma.vmem_to_hbm [thread:$0]  (%p1957_p4), %s2314_s27, 1024, %s2312_s8, %s2320_s21, %s1885_s25, %s1885_s25, %s1886_s29  }
 0x500 PF: > { %p1720_p0 = scmp.ge.s32.totalorder %s1881_s23, 2  ;;  %s1398_s7 = sand.u32 1, %s1861_s18  }
 0x501   : > { %s1399_s9 = scalar_lea.sflag [#allocation3], %s1398_s7 }
 0x502   : > { %p1717_p1 = pnand %p1720_p0, %p1964_p8 }
 0x504   : > { %p1718_p2 = pneg %p1717_p1 }
 0x506   : > { %1856 = dma.done.wait (%p1718_p2), %s1399_s9, 1024  }
 0x507   : > { %1858 = vsyncadd (%p1718_p2), %s1399_s9, 4294966272  ;;  %s18_s23 = sadd.s32 1, %s1881_s23   ;;  %s2373_s18 = smov %s1865_s19 }
 0x508   : > { %p15_p3 = scmp.ge.s32.totalorder %s18_s23, 4   ;;  %s2374_s19 = smov %s1869_s20 }
 0x509   : > { %s2375_s20 = smov %s1970_s6  ;;  %s2376_s21 = smov %s1877_s22 }
 0x50a   : > { %s2377_s22 = smov %s2379_s26  ;;  %17 = sbr.rel (!%p15_p3) target bundleno = 4 (0x4), region = 81 }
 0x50f   :  { %1404 = vsyncpa [#allocation3], 1 }
 0x510   :  { %1406 = vsyncpa [#allocation3 + $0x1], 1 }

</bundles_post_ra>
